<compile_context>
chip_gen: v6e
topology: v6e:2x2x1
jax: 0.10.0
libtpu: 0.0.40
codegen_flags: <defaults>
</compile_context>

<pallas_src>
import functools

import jax
import jax.numpy as jnp
from jax.experimental import pallas as pl
from jax.experimental.pallas import tpu as pltpu


def _largest_divisor(n, cap):
    for d in range(min(n, cap), 0, -1):
        if n % d == 0:
            return d
    return 1


def _conv_stats_kernel(x_ref, w_ref, conv_ref, sum_ref, sq_ref, *, kh, kw, row_tile):
    """One output-row tile of VALID conv (stride 1) + per-channel sum/sumsq.

    x_ref:    (1, H, W, Cin)        f32, resident across the (c, r) grid axes
    w_ref:    (KH*KW*Cin, Ct)       bf16, one 128-wide Cout tile of the im2col weight
    conv_ref: (1, th, Wo, Ct)       f32 conv output tile (lane-dense, Ct = 128)
    sum_ref:  (1, 1, Ct)            per-(n, c) channel sums, accumulated over r
    sq_ref:   (1, 1, Ct)            per-(n, c) channel sum-of-squares, accumulated over r
    """
    r = pl.program_id(2)
    th = conv_ref.shape[1]
    wo = conv_ref.shape[2]
    ct = conv_ref.shape[3]

    # Rows [row0, row0 + th + KH - 1) of the (resident) input image feed this tile.
    row0 = pl.multiple_of(r * row_tile, row_tile)
    xs = x_ref[0, pl.ds(row0, row_tile + kh - 1), :, :]          # (th+KH-1, W, Cin) f32

    # im2col: build the patch tensor once per tile, then do ONE MXU matmul with
    # K = KH*KW*Cin (the review's tap-fusion).  Concat order matches the
    # (KH, KW, Cin) -> (KH*KW*Cin) reshape of the weights in the wrapper.
    cols = []
    for dh in range(kh):
        for dw in range(kw):
            cols.append(xs[dh:dh + th, dw:dw + wo, :])           # (th, Wo, Cin)
    patches = jnp.concatenate(cols, axis=-1)                     # (th, Wo, KH*KW*Cin)

    # bf16 MXU operands, f32 accumulation (BN/SiLU stay f32).
    lhs = patches.reshape(th * wo, patches.shape[-1]).astype(jnp.bfloat16)
    acc = jnp.dot(lhs, w_ref[...], preferred_element_type=jnp.float32)   # (th*Wo, Ct)

    conv_ref[0] = acc.reshape(th, wo, ct)

    # Batch-norm statistics: accumulate sum / sum-of-squares per channel across the
    # row-tile ("arbitrary") grid axis into the resident stats output blocks.
    s = jnp.sum(acc, axis=0, keepdims=True).reshape(1, 1, ct)
    sq = jnp.sum(acc * acc, axis=0, keepdims=True).reshape(1, 1, ct)

    @pl.when(r == 0)
    def _():
        sum_ref[...] = jnp.zeros_like(sum_ref)
        sq_ref[...] = jnp.zeros_like(sq_ref)

    sum_ref[...] += s
    sq_ref[...] += sq


def _bn_act_kernel(conv_ref, scale_ref, shift_ref, o_ref):
    """Element-wise normalize (folded scale/shift) + SiLU over one lane-dense tile."""
    y = conv_ref[...] * scale_ref[...] + shift_ref[...]
    o_ref[...] = (y * jax.nn.sigmoid(y)).astype(o_ref.dtype)


def conv_bn_act(x_nchw, w_oihw, gamma, beta, *, eps=1e-5, row_tile=None, cout_tile=128):
    """NCHW in / NCHW out, matching PyTorch ConvBnAct.forward (default config)."""
    N, Cin, H, W = x_nchw.shape
    Cout, Cin_w, KH, KW = w_oihw.shape
    assert Cin == Cin_w, "groups=1 only"  # TODO(synk): grouped conv not implemented
    Ho, Wo = H - KH + 1, W - KW + 1
    assert Ho > 0 and Wo > 0

    if row_tile is None:
        row_tile = _largest_divisor(Ho, cap=64)
    assert Ho % row_tile == 0, "row_tile must divide the output height"
    n_rt = Ho // row_tile

    # Lane-dense output channels: pad Cout to a multiple of 128.
    cp = int(pl.cdiv(Cout, cout_tile)) * cout_tile
    n_ct = cp // cout_tile
    kkc = KH * KW * Cin

    # TODO(synk): keep activations NHWC end-to-end in the surrounding model to avoid
    # this boundary transpose (it costs a full HBM read+write at real sizes).
    x_nhwc = jnp.transpose(x_nchw, (0, 2, 3, 1)).astype(jnp.float32)     # (N, H, W, Cin)

    # (Cout, Cin, KH, KW) -> (KH, KW, Cin, Cout) -> (KH*KW*Cin, Cout) -> pad -> bf16.
    w2 = jnp.transpose(w_oihw, (2, 3, 1, 0)).reshape(kkc, Cout)
    w2 = jnp.pad(w2, ((0, 0), (0, cp - Cout))).astype(jnp.bfloat16)

    grid = (N, n_ct, n_rt)

    # ---------------- Pass 1: conv + per-channel sum / sumsq ----------------
    conv_out, sums, sqs = pl.pallas_call(
        functools.partial(_conv_stats_kernel, kh=KH, kw=KW, row_tile=row_tile),
        grid_spec=pltpu.PrefetchScalarGridSpec(
            num_scalar_prefetch=0,
            grid=grid,
            in_specs=[
                # Full image per batch element; block index constant across (c, r)
                # so it stays resident in VMEM (fetched once per n).
                pl.BlockSpec((1, H, W, Cin), lambda n, c, r: (n, 0, 0, 0)),
                # One 128-wide Cout tile of the im2col weight.
                pl.BlockSpec((kkc, cout_tile), lambda n, c, r: (0, c)),
            ],
            out_specs=[
                pl.BlockSpec((1, row_tile, Wo, cout_tile), lambda n, c, r: (n, r, 0, c)),
                pl.BlockSpec((1, 1, cout_tile), lambda n, c, r: (n, 0, c)),
                pl.BlockSpec((1, 1, cout_tile), lambda n, c, r: (n, 0, c)),
            ],
        ),
        out_shape=(
            jax.ShapeDtypeStruct((N, Ho, Wo, cp), jnp.float32),
            jax.ShapeDtypeStruct((N, 1, cp), jnp.float32),
            jax.ShapeDtypeStruct((N, 1, cp), jnp.float32),
        ),
        compiler_params=pltpu.CompilerParams(
            dimension_semantics=("parallel", "parallel", "arbitrary")),
    )(x_nhwc, w2)

    # -------- Tiny XLA epilogue: fold batch stats + gamma/beta to scale/shift -------
    m = float(N * Ho * Wo)
    total = jnp.sum(sums, axis=(0, 1))                    # (cp,)
    total_sq = jnp.sum(sqs, axis=(0, 1))                  # (cp,)
    mean = total / m
    var = jnp.maximum(total_sq / m - mean * mean, 0.0)    # biased var (PyTorch BN train)
    inv_std = jax.lax.rsqrt(var + eps)
    gamma_p = jnp.pad(gamma.astype(jnp.float32), (0, cp - Cout))
    beta_p = jnp.pad(beta.astype(jnp.float32), (0, cp - Cout))
    scale = (gamma_p * inv_std).reshape(1, cp)
    shift = (beta_p - mean * gamma_p * inv_std).reshape(1, cp)

    # ---------------- Pass 2: normalize + SiLU (fully parallel) ----------------
    out_nhwc = pl.pallas_call(
        _bn_act_kernel,
        grid_spec=pltpu.PrefetchScalarGridSpec(
            num_scalar_prefetch=0,
            grid=grid,
            in_specs=[
                pl.BlockSpec((1, row_tile, Wo, cout_tile), lambda n, c, r: (n, r, 0, c)),
                pl.BlockSpec((1, cout_tile), lambda n, c, r: (0, c)),
                pl.BlockSpec((1, cout_tile), lambda n, c, r: (0, c)),
            ],
            out_specs=pl.BlockSpec((1, row_tile, Wo, cout_tile),
                                   lambda n, c, r: (n, r, 0, c)),
        ),
        out_shape=jax.ShapeDtypeStruct((N, Ho, Wo, cp), jnp.float32),
        compiler_params=pltpu.CompilerParams(
            dimension_semantics=("parallel", "parallel", "parallel")),
    )(conv_out, scale, shift)

    out = out_nhwc[..., :Cout]                            # drop channel padding
    return jnp.transpose(out, (0, 3, 1, 2)).astype(x_nchw.dtype)   # back to NCHW


def _reference(x_nchw, w_oihw, gamma, beta, eps=1e-5):
    """Pure-JAX reference of the PyTorch forward (training-mode BN).

    Inputs are rounded to bf16 (as the kernel feeds the MXU) so the comparison
    isolates kernel bugs rather than bf16 operand rounding.
    """
    xb = x_nchw.astype(jnp.bfloat16).astype(jnp.float32)
    wb = w_oihw.astype(jnp.bfloat16).astype(jnp.float32)
    y = jax.lax.conv_general_dilated(
        xb, wb, window_strides=(1, 1), padding="VALID",
        dimension_numbers=("NCHW", "OIHW", "NCHW"),
        precision=jax.lax.Precision.HIGHEST)
    mean = y.mean(axis=(0, 2, 3), keepdims=True)
    var = y.var(axis=(0, 2, 3), keepdims=True)
    yn = (y - mean) / jnp.sqrt(var + eps)
    yn = yn * gamma.reshape(1, -1, 1, 1) + beta.reshape(1, -1, 1, 1)
    return yn * jax.nn.sigmoid(yn)


if __name__ == "__main__":
    key = jax.random.PRNGKey(0)
    k_x, k_w, k_g, k_b = jax.random.split(key, 4)

    N, C_IN, C_OUT, H, W, K = 2, 4, 8, 16, 16, 3

    x = jax.random.normal(k_x, (N, C_IN, H, W), dtype=jnp.float32)
    w = jax.random.normal(k_w, (C_OUT, C_IN, K, K), dtype=jnp.float32) * 0.1
    gamma = 1.0 + 0.1 * jax.random.normal(k_g, (C_OUT,), dtype=jnp.float32)
    beta = 0.1 * jax.random.normal(k_b, (C_OUT,), dtype=jnp.float32)

    # row_tile=7 -> 2 row tiles per image: exercises the tiled grid + stats accumulation.
    out = conv_bn_act(x, w, gamma, beta, row_tile=7)
    out = jax.block_until_ready(out)

    ref = _reference(x, w, gamma, beta)
    assert out.shape == (N, C_OUT, H - K + 1, W - K + 1), out.shape
    err = float(jnp.max(jnp.abs(out - ref)))
    assert err < 5e-3, err

    print("KERNEL_OK")
</pallas_src>

<mosaic_0001>
module attributes {stable_mosaic.version = 11 : i64} {
  func.func @_conv_stats_kernel(%arg0: i32, %arg1: i32, %arg2: i32, %arg3: memref<1x16x16x4xf32, #tpu.memory_space<vmem>>, %arg4: memref<36x128xbf16, #tpu.memory_space<vmem>>, %arg5: memref<1x7x14x128xf32, #tpu.memory_space<vmem>>, %arg6: memref<1x1x128xf32, #tpu.memory_space<vmem>>, %arg7: memref<1x1x128xf32, #tpu.memory_space<vmem>>) attributes {dimension_semantics = [#tpu.dimension_semantics<parallel>, #tpu.dimension_semantics<parallel>, #tpu.dimension_semantics<arbitrary>], iteration_bounds = array<i64: 2, 1, 2>, scalar_prefetch = 0 : i64, scratch_operands = 0 : i64, tpu.core_type = #tpu.core_type<tc>, window_params = [{transform_indices = @transform_0, window_bounds = array<i64: 1, 16, 16, 4>}, {transform_indices = @transform_1, window_bounds = array<i64: 36, 128>}, {transform_indices = @transform_2, window_bounds = array<i64: 1, 7, 14, 128>}, {transform_indices = @transform_3, window_bounds = array<i64: 1, 1, 128>}, {transform_indices = @transform_4, window_bounds = array<i64: 1, 1, 128>}]} {
    %c7_i32 = arith.constant 7 : i32
    %0 = arith.muli %arg2, %c7_i32 : i32
    %1 = tpu.assume_multiple %0, 7 : i32
    %c0 = arith.constant 0 : index
    %2 = arith.index_cast %1 : i32 to index
    %c0_0 = arith.constant 0 : index
    %c0_1 = arith.constant 0 : index
    %3 = vector.load %arg3[%c0, %2, %c0_0, %c0_1] : memref<1x16x16x4xf32, #tpu.memory_space<vmem>>, vector<1x9x16x4xf32>
    %4 = vector.shape_cast %3 : vector<1x9x16x4xf32> to vector<9x16x4xf32>
    %5 = vector.extract_strided_slice %4 {offsets = [0, 0, 0], sizes = [7, 14, 4], strides = [1, 1, 1]} : vector<9x16x4xf32> to vector<7x14x4xf32>
    %6 = vector.extract_strided_slice %4 {offsets = [0, 1, 0], sizes = [7, 14, 4], strides = [1, 1, 1]} : vector<9x16x4xf32> to vector<7x14x4xf32>
    %7 = vector.extract_strided_slice %4 {offsets = [0, 2, 0], sizes = [7, 14, 4], strides = [1, 1, 1]} : vector<9x16x4xf32> to vector<7x14x4xf32>
    %8 = vector.extract_strided_slice %4 {offsets = [1, 0, 0], sizes = [7, 14, 4], strides = [1, 1, 1]} : vector<9x16x4xf32> to vector<7x14x4xf32>
    %9 = vector.extract_strided_slice %4 {offsets = [1, 1, 0], sizes = [7, 14, 4], strides = [1, 1, 1]} : vector<9x16x4xf32> to vector<7x14x4xf32>
    %10 = vector.extract_strided_slice %4 {offsets = [1, 2, 0], sizes = [7, 14, 4], strides = [1, 1, 1]} : vector<9x16x4xf32> to vector<7x14x4xf32>
    %11 = vector.extract_strided_slice %4 {offsets = [2, 0, 0], sizes = [7, 14, 4], strides = [1, 1, 1]} : vector<9x16x4xf32> to vector<7x14x4xf32>
    %12 = vector.extract_strided_slice %4 {offsets = [2, 1, 0], sizes = [7, 14, 4], strides = [1, 1, 1]} : vector<9x16x4xf32> to vector<7x14x4xf32>
    %13 = vector.extract_strided_slice %4 {offsets = [2, 2, 0], sizes = [7, 14, 4], strides = [1, 1, 1]} : vector<9x16x4xf32> to vector<7x14x4xf32>
    %14 = tpu.concatenate %5, %6, %7, %8, %9, %10, %11, %12, %13 in 2 : vector<7x14x4xf32>, vector<7x14x4xf32>, vector<7x14x4xf32>, vector<7x14x4xf32>, vector<7x14x4xf32>, vector<7x14x4xf32>, vector<7x14x4xf32>, vector<7x14x4xf32>, vector<7x14x4xf32> -> vector<7x14x36xf32>
    %15 = vector.shape_cast %14 : vector<7x14x36xf32> to vector<98x36xf32>
    %16 = arith.truncf %15 : vector<98x36xf32> to vector<98x36xbf16>
    %c0_2 = arith.constant 0 : index
    %c0_3 = arith.constant 0 : index
    %17 = vector.load %arg4[%c0_2, %c0_3] : memref<36x128xbf16, #tpu.memory_space<vmem>>, vector<36x128xbf16>
    %cst = arith.constant dense<0.000000e+00> : vector<98x128xf32>
    %18 = tpu.matmul %16, %17, %cst {dimension_numbers = #tpu.dot_dimension_numbers<[1], [0], [0], [1], [0, 0, 1, 1], [], []>} : vector<98x36xbf16>, vector<36x128xbf16>, vector<98x128xf32> -> vector<98x128xf32>
    %19 = vector.shape_cast %18 : vector<98x128xf32> to vector<7x14x128xf32>
    %c0_4 = arith.constant 0 : index
    %c0_5 = arith.constant 0 : index
    %c0_6 = arith.constant 0 : index
    %c0_7 = arith.constant 0 : index
    %20 = vector.load %arg5[%c0_4, %c0_5, %c0_6, %c0_7] : memref<1x7x14x128xf32, #tpu.memory_space<vmem>>, vector<1x7x14x128xf32>
    %21 = vector.shape_cast %20 : vector<1x7x14x128xf32> to vector<7x14x128xf32>
    %22 = vector.shape_cast %19 : vector<7x14x128xf32> to vector<1x7x14x128xf32>
    tpu.vector_store %arg5[%c0_4, %c0_5, %c0_6, %c0_7], %22 {strides = array<i32>} : memref<1x7x14x128xf32, #tpu.memory_space<vmem>>, vector<1x7x14x128xf32>,
    %cst_8 = arith.constant dense<0.000000e+00> : vector<128xf32>
    %23 = vector.multi_reduction <add>, %18, %cst_8 [0] : vector<98x128xf32> to vector<128xf32>
    %24 = vector.shape_cast %23 : vector<128xf32> to vector<1x128xf32>
    %25 = vector.shape_cast %24 : vector<1x128xf32> to vector<1x1x128xf32>
    %26 = arith.mulf %18, %18 : vector<98x128xf32>
    %cst_9 = arith.constant dense<0.000000e+00> : vector<128xf32>
    %27 = vector.multi_reduction <add>, %26, %cst_9 [0] : vector<98x128xf32> to vector<128xf32>
    %28 = vector.shape_cast %27 : vector<128xf32> to vector<1x128xf32>
    %29 = vector.shape_cast %28 : vector<1x128xf32> to vector<1x1x128xf32>
    %c0_i32 = arith.constant 0 : i32
    %30 = arith.cmpi eq, %arg2, %c0_i32 : i32
    %31 = arith.extui %30 : i1 to i32
    %c0_i32_10 = arith.constant 0 : i32
    %32 = arith.cmpi ne, %31, %c0_i32_10 : i32
    scf.if %32 {
      %cst_23 = arith.constant 0.000000e+00 : f32
      %39 = vector.broadcast %cst_23 : f32 to vector<1x1x128xf32>
      %c0_24 = arith.constant 0 : index
      %c0_25 = arith.constant 0 : index
      %c0_26 = arith.constant 0 : index
      %40 = vector.load %arg6[%c0_24, %c0_25, %c0_26] : memref<1x1x128xf32, #tpu.memory_space<vmem>>, vector<1x1x128xf32>
      tpu.vector_store %arg6[%c0_24, %c0_25, %c0_26], %39 {strides = array<i32>} : memref<1x1x128xf32, #tpu.memory_space<vmem>>, vector<1x1x128xf32>,
      %cst_27 = arith.constant 0.000000e+00 : f32
      %41 = vector.broadcast %cst_27 : f32 to vector<1x1x128xf32>
      %c0_28 = arith.constant 0 : index
      %c0_29 = arith.constant 0 : index
      %c0_30 = arith.constant 0 : index
      %42 = vector.load %arg7[%c0_28, %c0_29, %c0_30] : memref<1x1x128xf32, #tpu.memory_space<vmem>>, vector<1x1x128xf32>
      tpu.vector_store %arg7[%c0_28, %c0_29, %c0_30], %41 {strides = array<i32>} : memref<1x1x128xf32, #tpu.memory_space<vmem>>, vector<1x1x128xf32>,
    } else {
    }
    %c0_11 = arith.constant 0 : index
    %c0_12 = arith.constant 0 : index
    %c0_13 = arith.constant 0 : index
    %33 = vector.load %arg6[%c0_11, %c0_12, %c0_13] : memref<1x1x128xf32, #tpu.memory_space<vmem>>, vector<1x1x128xf32>
    %34 = arith.addf %33, %25 : vector<1x1x128xf32>
    %c0_14 = arith.constant 0 : index
    %c0_15 = arith.constant 0 : index
    %c0_16 = arith.constant 0 : index
    %35 = vector.load %arg6[%c0_14, %c0_15, %c0_16] : memref<1x1x128xf32, #tpu.memory_space<vmem>>, vector<1x1x128xf32>
    tpu.vector_store %arg6[%c0_14, %c0_15, %c0_16], %34 {strides = array<i32>} : memref<1x1x128xf32, #tpu.memory_space<vmem>>, vector<1x1x128xf32>,
    %c0_17 = arith.constant 0 : index
    %c0_18 = arith.constant 0 : index
    %c0_19 = arith.constant 0 : index
    %36 = vector.load %arg7[%c0_17, %c0_18, %c0_19] : memref<1x1x128xf32, #tpu.memory_space<vmem>>, vector<1x1x128xf32>
    %37 = arith.addf %36, %29 : vector<1x1x128xf32>
    %c0_20 = arith.constant 0 : index
    %c0_21 = arith.constant 0 : index
    %c0_22 = arith.constant 0 : index
    %38 = vector.load %arg7[%c0_20, %c0_21, %c0_22] : memref<1x1x128xf32, #tpu.memory_space<vmem>>, vector<1x1x128xf32>
    tpu.vector_store %arg7[%c0_20, %c0_21, %c0_22], %37 {strides = array<i32>} : memref<1x1x128xf32, #tpu.memory_space<vmem>>, vector<1x1x128xf32>,
    return
  }
  func.func @transform_0(%arg0: i32, %arg1: i32, %arg2: i32) -> (i32, i32, i32, i32) {
    %c0_i32 = arith.constant 0 : i32
    %c0_i32_0 = arith.constant 0 : i32
    %c0_i32_1 = arith.constant 0 : i32
    %c0_i32_2 = arith.constant 0 : i32
    return %arg0, %c0_i32, %c0_i32_0, %c0_i32_1 : i32, i32, i32, i32
  }
  func.func @transform_1(%arg0: i32, %arg1: i32, %arg2: i32) -> (i32, i32) {
    %c0_i32 = arith.constant 0 : i32
    %c0_i32_0 = arith.constant 0 : i32
    return %c0_i32, %arg1 : i32, i32
  }
  func.func @transform_2(%arg0: i32, %arg1: i32, %arg2: i32) -> (i32, i32, i32, i32) {
    %c0_i32 = arith.constant 0 : i32
    %c0_i32_0 = arith.constant 0 : i32
    return %arg0, %arg2, %c0_i32, %arg1 : i32, i32, i32, i32
  }
  func.func @transform_3(%arg0: i32, %arg1: i32, %arg2: i32) -> (i32, i32, i32) {
    %c0_i32 = arith.constant 0 : i32
    %c0_i32_0 = arith.constant 0 : i32
    return %arg0, %c0_i32, %arg1 : i32, i32, i32
  }
  func.func @transform_4(%arg0: i32, %arg1: i32, %arg2: i32) -> (i32, i32, i32) {
    %c0_i32 = arith.constant 0 : i32
    %c0_i32_0 = arith.constant 0 : i32
    return %arg0, %c0_i32, %arg1 : i32, i32, i32
  }
}

</mosaic_0001>

<bundles_post_ra>
// kernel: tpu_custom_call.1
= control target key start
LH: loop header
LB: loop body
LE: loop exit
PB: predicated region body
PF: predicated region fallthrough
CT: control target
= control target key end

     0   :  { %10 = vsyncpa [#allocation3], 0  ;;  %s3425_s0 = inlined_call_operand.vmem [shape: f32[2,16,16,4], index: 0, kind: input, shape index: {}]   ;;  %s3426_s1 = inlined_call_operand.vmem [shape: bf16[36,128], index: 1, kind: input, shape index: {}]   ;;  %s3427_s2 = inlined_call_operand.vmem [shape: f32[2,14,14,128], index: 2, kind: output, shape index: {0}]   ;;  %s3428_s3 = inlined_call_operand.hbm [shape: f32[2,1,128], index: 3, kind: output, shape index: {1}]   ;;  %s3429_s4 = inlined_call_operand.hbm [shape: f32[2,1,128], index: 4, kind: output, shape index: {2}]  }
   0x1   :  { %12 = vsyncpa [#allocation3 + $0x1], 0 }
   0x2   :  { %13 = vsyncpa [#allocation5], 0 }
   0x3   :  { %15 = vsyncpa [#allocation5 + $0x1], 0  ;;  %s2532_s15 = smov 0   ;;  %s2534_s16 = smov 0  }
   0x4   :  { %s2536_s17 = smov 0   ;;  %s2538_s18 = smov 0  }
   0x5   :  { %s2540_s19 = smov 0   ;;  %s2542_s20 = smov 0  }
   0x6   :  { %s2544_s21 = smov 0   ;;  %s2546_s22 = smov 0  }
   0x7 LB: > { %s2200_s23 = sadd.s32 4294967295, %s2491_s22   ;;  %s2201_s24 = sadd.s32 4294967294, %s2491_s22   ;;  %s2491_s22 = sphi %s2546_s22, %s21_s22   ;;  %s2487_s21 = sphi %s2544_s21, %s3438_s21   ;;  %s2483_s20 = sphi %s2542_s20, %s3437_s20   ;;  %s2479_s19 = sphi %s2540_s19, %s3436_s19   ;;  %s2475_s18 = sphi %s2538_s18, %s3435_s18   ;;  %s2471_s17 = sphi %s2536_s17, %s3434_s17   ;;  %s2467_s16 = sphi %s2534_s16, %s3433_s16   ;;  %s2463_s15 = sphi %s2532_s15, %s3432_s15  }
   0x8   : > { %s33_s25 = sadd.s32 1, %s2483_s20  ;;  %s40_s26 = sadd.s32 1, %s2487_s21 }
   0x9   : > { %p34_p0 = scmp.ge.s32.totalorder %s33_s25, 2  ;;  %p141_p1 = scmp.ne.s32.totalorder %s2471_s17, %s2467_s16 }
   0xa   : > { %p142_p2 = scmp.eq.s32.totalorder %s2200_s23, 3  ;;  %p147_p4 = scmp.ne.s32.totalorder %s2467_s16, %s2463_s15 }
   0xb   : > { %s3440_s25 = smov (%p34_p0, %s33_s25), 0  ;;  %s3442_s26 = smov (!%p34_p0, %s40_s26), %s2487_s21 }
   0xc   : > { %p2581_p3 = por %p142_p2, %p141_p1  ;;  %p42_p5 = scmp.ge.s32.totalorder %s3442_s26, 2 }
   0xd   : > { %p148_p6 = scmp.eq.s32.totalorder %s2201_s24, 3  ;;  %p2205_p7 = scmp.ge.s32.totalorder %s2491_s22, 1 }
   0xe   : > { %p209_p8 = scmp.lt.s32.totalorder %s2491_s22, 5  ;;  %s3444_s26 = smov (%p42_p5, %s3442_s26), 0 }
   0xf   : > { %p2591_p9 = por %p148_p6, %p147_p4  ;;  %s126_s29 = ssub.s32 %s2487_s21, %s3444_s26 }
  0x10   : > { %p210_p10 = pnand %p2205_p7, %p209_p8  ;;  %s131_s30 = sadd.s32 1, %s2471_s17 }
  0x11   : > { %p129_p11 = scmp.eq.s32.totalorder %s126_s29, 0  ;;  %p255_p12 = scmp.lt.s32.totalorder (!%p210_p10), %s2479_s19, 1 }
  0x12   : > { %213 = sbr.rel (%p210_p10) target bundleno = 645 (0x285), region = 28  ;;  %s2493_s13 = smov (!%p210_p10), 12  }
  0x13   : > { %s2599_s5 = scalar_select %p129_p11, %s2471_s17, %s131_s30  }
  0x14   : > { %s2210_s6 = smul.u32 (!%p210_p10), 112, %s2475_s18  ;;  %s2494_s14 = smov (!%p210_p10), 8  }
  0x15   : > { %s2495_s23 = smov (!%p210_p10), 4   ;;  %s2496_s24 = smov (!%p210_p10), 16  }
  0x16   : > { %s2497_s29 = smov (!%p210_p10), 20   ;;  %s2498_s30 = smov (!%p210_p10), 24  }
  0x17   : > { %s2604_s7 = scalar_select %p255_p12, %s2479_s19, 1  ;;  %vm314_vm0 = vcmask 1046528   ;;  %vm378_vm1 = vcmask 1045504   ;;  %v2366_v24 = vld [vmem:[%s3426_s1 + $0x10] ss:$0 sps:$4 sm:$0x33]  }
  0x18   : > { %vm1348_vm2 = vcmask 1041408   ;;  %v2501_v25 = vmov 0.0   ;;  %v2367_v29 = vld [vmem:[%s3426_s1 + $0x8] sm:$0xff]   ;;  %v2368_v34 = vld [vmem:[%s3426_s1] sm:$0xff]   ;;  %vm2502_vm3 = vmmov 0   ;;  %vm710_vm4 = vcmask 31744  }
  0x19   : > { %s2226_s8 = sshll.u32 %s2604_s7, 8  ;;  %2237 = vmatprep.subr.bf16.mxu0 %v2501_v25  ;;  %v1350_v26 = vsel %vm1348_vm2, %v2366_v24, 0  ;;  %2271 = vmatprep.subr.bf16.mxu1 %v2501_v25  ;;  %vm725_vm5 = vcmask 64512   ;;  %vm740_vm6 = vcmask 97280   ;;  %vm755_vm7 = vcmask 130048   ;;  %p2221_p0 = scmp.ne.s32.totalorder %s2475_s18, 0 }
  0x1a   : > { %s259_s11 = scalar_lea.vmem %s3425_s0, %s2226_s8  ;;  %s2500_s8 = smov 32   ;;  %2238 = vmatpush3.bf16.msra.mxu0 %v1350_v26  ;;  %2274 = vmatpush3.bf16.msra.mxu1 %v1350_v26  ;;  %vm770_vm8 = vcmask 162816   ;;  %vm785_vm9 = vcmask 195584   ;;  %vm800_vm10 = vcmask 228352   ;;  %vm815_vm11 = vcmask 261120  }
  0x1b   : > { %s2610_s12 = scalar_lea.vmem %s259_s11, %s2210_s6  ;;  %s2499_s6 = smov 28   ;;  %2239 = vmatprep.subr.bf16.mxu0 %v2501_v25  ;;  %2272 = vmatprep.subr.bf16.mxu1 %v2501_v25  ;;  %vm1326_vm12 = vcmask 293888  }
  0x1c   : > { %v2613_v0 = vld [vmem:[%s2610_s12 + $0x10] sm:$0xff]  ;;  %v2616_v1 = vld [vmem:[%s2610_s12 + $0x8] sm:$0xff]  ;;  %v2619_v2 = vld [vmem:[%s2610_s12] sm:$0xff]  ;;  %s2687_s11 = sand.u32 1, %s2467_s16   ;;  %2243 = vmatprep.mubr.msk.bf16.mxu0 %vm2502_vm3, %v2501_v25  ;;  %2259 = vmatprep.mubr.msk.bf16.mxu1 %vm2502_vm3, %v2501_v25 }
  0x1d   : > { %444 = vrot.lane.b32.xlu1 %v2613_v0, %s2493_s13  ;;  %v380_v3 = vrot.slane %v2616_v1, 2  ;;  %v316_v4 = vrot.slane %v2616_v1, 1  ;;  %v315_v5 = vrot.slane %v2619_v2, 1  ;;  %v2627_v6 = vld [vmem:[%s2610_s12 + $0x18] sm:$0xff]  ;;  %v318_v7 = vrot.slane %v2613_v0, 1  ;;  %v2651_v16 = vld [vmem:[%s2610_s12 + $0x20] sm:$0xff] }
  0x1e   : > { %v2631_v8 = vrot.slane %v2627_v6, 1  ;;  %v379_v10 = vrot.slane %v2619_v2, 2  ;;  %v382_v13 = vrot.slane %v2613_v0, 2  ;;  %v383_v14 = vrot.slane %v2627_v6, 2  ;;  %v2655_v17 = vld [vmem:[%s2610_s12 + $0x28] sm:$0xff]  ;;  %v2693_v27 = vld [vmem:[%s2610_s12 + $0x30] sm:$0xff]  ;;  %2240 = vmatpush3.bf16.msra.mxu0 %v2367_v29  ;;  %2275 = vmatpush3.bf16.msra.mxu1 %v2367_v29 }
  0x1f   : > { %402 = vrot.lane.b32.xlu0 %v380_v3, %s2494_s14  ;;  %v317_v9 = vsel %vm314_vm0, %v315_v5, %v316_v4  ;;  %v321_v18 = vrot.slane %v2651_v16, 1  ;;  %v2661_v19 = vrot.slane %v2655_v17, 1  ;;  %v385_v21 = vrot.slane %v2651_v16, 2  ;;  %v2699_v28 = vld [vmem:[%s2610_s12 + $0x38] sm:$0xff]  ;;  %2241 = vmatprep.subr.bf16.mxu0 %v2501_v25  ;;  %v2744_v37 = vld [vmem:[%s2610_s12 + $0x40] sm:$0xff]  ;;  %v2747_v38 = vld [vmem:[%s2610_s12 + $0x48] sm:$0xff] }
  0x20   : > { %v320_v11 = vsel %vm314_vm0, %v318_v7, %v2631_v8  ;;  %v381_v12 = vsel %vm378_vm1, %v379_v10, %v380_v3  ;;  %v384_v15 = vsel %vm378_vm1, %v382_v13, %v383_v14  ;;  %v2670_v22 = vrot.slane %v2655_v17, 2  ;;  %2273 = vmatprep.subr.bf16.mxu1 %v2501_v25  ;;  %v2779_v45 = vld [vmem:[%s2610_s12 + $0x50] sm:$0xff]  ;;  %v2782_v46 = vld [vmem:[%s2610_s12 + $0x58] sm:$0xff]  ;;  %v2815_v53 = vld [vmem:[%s2610_s12 + $0x60] sm:$0xff] }
  0x21   : > { %338 = vrot.lane.b32.xlu1 %v316_v4, %s2495_s23  ;;  %v323_v20 = vsel %vm314_vm0, %v321_v18, %v2661_v19  ;;  %v324_v30 = vrot.slane %v2693_v27, 1  ;;  %v2710_v31 = vrot.slane %v2699_v28, 1  ;;  %v388_v32 = vrot.slane %v2693_v27, 2  ;;  %v2826_v54 = vld [vmem:[%s2610_s12 + $0x68] sm:$0xff]  ;;  %v2894_v26 = vld [vmem:[%s2610_s12 + $0x78] sm:$0xff] }
  0x22   : > { %v387_v23 = vsel %vm378_vm1, %v385_v21, %v2670_v22  ;;  %v2716_v33 = vrot.slane %v2699_v28, 2  ;;  %2242 = vmatpush3.bf16.msra.mxu0 %v2368_v34  ;;  %2276 = vmatpush3.bf16.msra.mxu1 %v2368_v34  ;;  %v327_v39 = vrot.slane %v2744_v37, 1  ;;  %v2752_v40 = vrot.slane %v2747_v38, 1 }
  0x23   : > { %336 = vrot.lane.b32.xlu0 %v317_v9, %s2495_s23  ;;  %v326_v35 = vsel %vm314_vm0, %v324_v30, %v2710_v31  ;;  %v391_v42 = vrot.slane %v2744_v37, 2  ;;  %v2762_v43 = vrot.slane %v2747_v38, 2  ;;  %v330_v47 = vrot.slane %v2779_v45, 1 }
  0x24   : > { %v390_v36 = vsel %vm378_vm1, %v388_v32, %v2716_v33  ;;  %v329_v41 = vsel %vm314_vm0, %v327_v39, %v2752_v40  ;;  %v2788_v48 = vrot.slane %v2782_v46, 1  ;;  %v394_v49 = vrot.slane %v2779_v45, 2 }
  0x25   : > { %489 = vrot.lane.b32.xlu1 %v320_v11, %s2496_s24  ;;  %v393_v44 = vsel %vm378_vm1, %v391_v42, %v2762_v43  ;;  %v2794_v50 = vrot.slane %v2782_v46, 2  ;;  %v333_v55 = vrot.slane %v2815_v53, 1  ;;  %v2832_v56 = vrot.slane %v2826_v54, 1 }
  0x26   : > { %v2800_v51 = vsel %vm314_vm0, %v330_v47, %v2788_v48  ;;  %v397_v63 = vrot.slane %v2815_v53, 2  ;;  %v2851_v3 = vrot.slane %v2826_v54, 2  ;;  %v2503_v29 = vmov 1983009808  }
  0x27   : > { %400 = vrot.lane.b32.xlu0 %v381_v12, %s2494_s14  ;;  %v2806_v52 = vsel %vm378_vm1, %v394_v49, %v2794_v50  ;;  %v2839_v58 = vsel %vm314_vm0, %v333_v55, %v2832_v56  ;;  %v846_v30 = vunpack.c.l.s4 %v2503_v29 }
  0x28   : > { %v2858_v7 = vsel %vm378_vm1, %v397_v63, %v2851_v3 }
  0x29   : > { %446 = vrot.lane.b32.xlu1 %v2627_v6, %s2493_s13 }
  0x2b   : > { %340 = vrot.lane.b32.xlu0 %v320_v11, %s2495_s23 }
  0x2d   : > { %404 = vrot.lane.b32.xlu1 %v384_v15, %s2494_s14 }
  0x2f   : > { %534 = vrot.lane.b32.xlu0 %v384_v15, %s2497_s29  ;;  %v2878_v15 = vld [vmem:[%s2610_s12 + $0x70] sm:$0xff] }
  0x30   : > { %v486_v34 = vrot.slane %v2878_v15, 1 }
  0x31   : > { %578 = vrot.lane.b32.xlu1 %v2651_v16, %s2498_s30 }
  0x33   : > { %491 = vrot.lane.b32.xlu0 %v2631_v8, %s2496_s24 }
  0x35   : > { %536 = vrot.lane.b32.xlu1 %v383_v14, %s2497_s29 }
  0x37   : > { %448 = vrot.lane.b32.xlu0 %v2651_v16, %s2493_s13 }
  0x39   : > { %493 = vrot.lane.b32.xlu1 %v323_v20, %s2496_s24 }
  0x3b   : > { %623 = vrot.lane.b32.xlu0 %v323_v20, %s2499_s6 }
  0x3d   : > { %668 = vrot.lane.b32.xlu1 %v387_v23, %s2500_s8 }
  0x3f   : > { %580 = vrot.lane.b32.xlu0 %v2655_v17, %s2498_s30 }
  0x41   : > { %625 = vrot.lane.b32.xlu1 %v2661_v19, %s2499_s6 }
  0x43   : > { %538 = vrot.lane.b32.xlu0 %v387_v23, %s2497_s29 }
  0x45   : > { %670 = vrot.lane.b32.xlu1 %v2670_v22, %s2500_s8 }
  0x47   : > { %582 = vrot.lane.b32.xlu0 %v2693_v27, %s2498_s30 }
  0x49   : > { %344 = vrot.lane.b32.xlu1 %v323_v20, %s2495_s23 }
  0x4b   : > { %342 = vrot.lane.b32.xlu0 %v2631_v8, %s2495_s23 }
  0x4d   : > { %406 = vrot.lane.b32.xlu1 %v383_v14, %s2494_s14 }
  0x4f   : > { %627 = vrot.lane.b32.xlu0 %v326_v35, %s2499_s6 }
  0x51   : > { %672 = vrot.lane.b32.xlu1 %v390_v36, %s2500_s8 }
  0x53   : > { %408 = vrot.lane.b32.xlu0 %v387_v23, %s2494_s14 }
  0x55   : > { %452 = vrot.lane.b32.xlu1 %v2693_v27, %s2493_s13 }
  0x57   : > { %450 = vrot.lane.b32.xlu0 %v2655_v17, %s2493_s13 }
  0x59   : > { %497 = vrot.lane.b32.xlu1 %v326_v35, %s2496_s24 }
  0x5b   : > { %495 = vrot.lane.b32.xlu0 %v2661_v19, %s2496_s24 }
  0x5d   : > { %542 = vrot.lane.b32.xlu1 %v390_v36, %s2497_s29 }
  0x5f   : > { %540 = vrot.lane.b32.xlu0 %v2670_v22, %s2497_s29 }
  0x61   : > { %586 = vrot.lane.b32.xlu1 %v2744_v37, %s2498_s30 }
  0x63   : > { %584 = vrot.lane.b32.xlu0 %v2699_v28, %s2498_s30 }
  0x65   : > { %631 = vrot.lane.b32.xlu1 %v329_v41, %s2499_s6 }
  0x67   : > { %629 = vrot.lane.b32.xlu0 %v2710_v31, %s2499_s6 }
  0x69   : > { %676 = vrot.lane.b32.xlu1 %v393_v44, %s2500_s8 }
  0x6b   : > { %674 = vrot.lane.b32.xlu0 %v2716_v33, %s2500_s8 }
  0x6d   : > { %348 = vrot.lane.b32.xlu1 %v326_v35, %s2495_s23  ;;  %v2902_v35 = vrot.slane %v2894_v26, 1 }
  0x6f   : > { %346 = vrot.lane.b32.xlu0 %v2661_v19, %s2495_s23  ;;  %v2914_v49 = vsel %vm314_vm0, %v486_v34, %v2902_v35 }
  0x71   : > { %412 = vrot.lane.b32.xlu1 %v390_v36, %s2494_s14 }
  0x73   : > { %410 = vrot.lane.b32.xlu0 %v2670_v22, %s2494_s14 }
  0x75   : > { %456 = vrot.lane.b32.xlu1 %v2744_v37, %s2493_s13 }
  0x77   : > { %454 = vrot.lane.b32.xlu0 %v2699_v28, %s2493_s13 }
  0x79   : > { %499 = vrot.lane.b32.xlu1 %v2710_v31, %s2496_s24 }
  0x7b   : > { %356 = vrot.lane.b32.xlu0 %v2800_v51, %s2495_s23 }
  0x7d   : > { %420 = vrot.lane.b32.xlu1 %v2806_v52, %s2494_s14 }
  0x7f   : > { %501 = vrot.lane.b32.xlu0 %v329_v41, %s2496_s24 }
  0x81   : > { %546 = vrot.lane.b32.xlu1 %v393_v44, %s2497_s29 }
  0x83   : > { %544 = vrot.lane.b32.xlu0 %v2716_v33, %s2497_s29 }
  0x85   : > { %464 = vrot.lane.b32.xlu1 %v2815_v53, %s2493_s13 }
  0x87   : > { %354 = vrot.lane.b32.xlu0 %v2752_v40, %s2495_s23 }
  0x89   : > { %590 = vrot.lane.b32.xlu1 %v2779_v45, %s2498_s30 }
  0x8b   : > { %588 = vrot.lane.b32.xlu0 %v2747_v38, %s2498_s30 }
  0x8d   : > { %418 = vrot.lane.b32.xlu1 %v2762_v43, %s2494_s14 }
  0x8f   : > { %v445_v57 = vpop.permute.xlu1 %444  ;;  %352 = vrot.lane.b32.xlu0 %v329_v41, %s2495_s23  ;;  %v848_v41 = vlaneseq }
  0x91   : > { %v403_v59 = vpop.permute.xlu0 %402  ;;  %633 = vrot.lane.b32.xlu1 %v2752_v40, %s2499_s6 }
  0x93   : > { %v339_v60 = vpop.permute.xlu1 %338  ;;  %509 = vrot.lane.b32.xlu0 %v2839_v58, %s2496_s24 }
  0x94   : > { %v712_v22 = vsel %vm710_vm4, %v2616_v1, %v339_v60 }
  0x95   : > { %358 = vrot.lane.b32.xlu1 %v2788_v48, %s2495_s23  ;;  %v337_v61 = vpop.permute.xlu0 %336  ;;  %v727_v32 = vsel %vm725_vm5, %v712_v22, %v403_v59  ;;  %v849_v59 = vshrl.u32 %v848_v41, 7 }
  0x96   : > { %v711_v12 = vsel %vm710_vm4, %v2619_v2, %v337_v61 }
  0x97   : > { %v490_v62 = vpop.permute.xlu1 %489  ;;  %635 = vrot.lane.b32.xlu0 %v2800_v51, %s2499_s6 }
  0x99   : > { %462 = vrot.lane.b32.xlu1 %v2782_v46, %s2493_s13  ;;  %v401_v4 = vpop.permute.xlu0 %400 }
  0x9a   : > { %v726_v14 = vsel %vm725_vm5, %v711_v12, %v401_v4 }
  0x9b   : > { %v447_v5 = vpop.permute.xlu1 %446  ;;  %416 = vrot.lane.b32.xlu0 %v393_v44, %s2494_s14  ;;  %v741_v19 = vsel %vm740_vm6, %v726_v14, %v445_v57  ;;  %v847_v57 = vunpack.c.0.s8 %v846_v30 }
  0x9c   : > { %v756_v21 = vsel %vm755_vm7, %v741_v19, %v490_v62  ;;  %v742_v36 = vsel %vm740_vm6, %v727_v32, %v447_v5  ;;  %v531_v62 = vrot.slane %v2878_v15, 2 }
  0x9d   : > { %678 = vrot.lane.b32.xlu1 %v2762_v43, %s2500_s8  ;;  %v2862_v8 = vpop.permute.xlu0 %340 }
  0x9e   : > { %v713_v5 = vsel %vm710_vm4, %v2613_v0, %v2862_v8 }
  0x9f   : > { %v2864_v9 = vpop.permute.xlu1 %404  ;;  %554 = vrot.lane.b32.xlu0 %v2858_v7, %s2497_s29 }
  0xa1   : > { %350 = vrot.lane.b32.xlu1 %v2710_v31, %s2495_s23  ;;  %v535_v10 = vpop.permute.xlu0 %534 }
  0xa2   : > { %v771_v23 = vsel %vm770_vm8, %v756_v21, %v535_v10  ;;  %v2929_v10 = vsub.s32 %v847_v57, %v849_v59 }
  0xa3   : > { %v579_v11 = vpop.permute.xlu1 %578  ;;  %680 = vrot.lane.b32.xlu0 %v2806_v52, %s2500_s8 }
  0xa4   : > { %v786_v1 = vsel %vm785_vm9, %v771_v23, %v579_v11 }
  0xa5   : > { %460 = vrot.lane.b32.xlu1 %v2779_v45, %s2493_s13  ;;  %v492_v13 = vpop.permute.xlu0 %491 }
  0xa7   : > { %v537_v18 = vpop.permute.xlu1 %536  ;;  %422 = vrot.lane.b32.xlu0 %v2794_v50, %s2494_s14 }
  0xa9   : > { %598 = vrot.lane.b32.xlu1 %v2878_v15, %s2498_s30  ;;  %v449_v2 = vpop.permute.xlu0 %448 }
  0xab   : > { %v494_v20 = vpop.permute.xlu1 %493  ;;  %507 = vrot.lane.b32.xlu0 %v2788_v48, %s2496_s24 }
  0xad   : > { %466 = vrot.lane.b32.xlu1 %v2826_v54, %s2493_s13  ;;  %v624_v24 = vpop.permute.xlu0 %623 }
  0xae   : > { %v801_v39 = vsel %vm800_vm10, %v786_v1, %v624_v24 }
  0xaf   : > { %v669_v31 = vpop.permute.xlu1 %668  ;;  %414 = vrot.lane.b32.xlu0 %v2716_v33, %s2494_s14  ;;  %v757_v33 = vsel %vm755_vm7, %v742_v36, %v492_v13 }
  0xb0   : > { %v816_v47 = vsel %vm815_vm11, %v801_v39, %v669_v31  ;;  %v772_v55 = vsel %vm770_vm8, %v757_v33, %v537_v18  ;;  %v728_v18 = vsel %vm725_vm5, %v713_v5, %v2864_v9 }
  0xb1   : > { %552 = vrot.lane.b32.xlu1 %v2794_v50, %s2497_s29  ;;  %v581_v42 = vpop.permute.xlu0 %580  ;;  %v844_v63 = vcombine.high %v816_v47, %v816_v47  ;;  %v743_v8 = vsel %vm740_vm6, %v728_v18, %v449_v2 }
  0xb2   : > { %v787_v61 = vsel %vm785_vm9, %v772_v55, %v581_v42  ;;  %v758_v23 = vsel %vm755_vm7, %v743_v8, %v494_v20 }
  0xb3   : > { %v626_v44 = vpop.permute.xlu1 %625  ;;  %505 = vrot.lane.b32.xlu0 %v2800_v51, %s2496_s24  ;;  %v2922_v51 = vrot.slane %v2894_v26, 2  ;;  %v858_v19 = vrot.slane %v844_v63, %v2929_v10 }
  0xb4   : > { %v802_v11 = vsel %vm800_vm10, %v787_v61, %v626_v44 }
  0xb5   : > { %458 = vrot.lane.b32.xlu1 %v2747_v38, %s2493_s13  ;;  %v539_v60 = vpop.permute.xlu0 %538  ;;  %v2937_v14 = vsel %vm378_vm1, %v531_v62, %v2922_v51  ;;  %v860_v24 = vcombine.high %v858_v19, %v858_v19 }
  0xb6   : > { %v773_v29 = vsel %vm770_vm8, %v758_v23, %v539_v60 }
  0xb7   : > { %v671_v4 = vpop.permute.xlu1 %670  ;;  %643 = vrot.lane.b32.xlu0 %v2914_v49, %s2499_s6  ;;  %v1076_v36 = vcombine.low %v858_v19, %v860_v24 }
  0xb8   : > { %v817_v13 = vsel %vm815_vm11, %v802_v11, %v671_v4 }
  0xb9   : > { %550 = vrot.lane.b32.xlu1 %v2806_v52, %s2497_s29  ;;  %v583_v12 = vpop.permute.xlu0 %582  ;;  %v851_v52 = vrot.slane %v816_v47, %v2929_v10  ;;  %v868_v21 = vrot.slane %v817_v13, %v2929_v10  ;;  %v861_v31 = vcombine.high %v817_v13, %v817_v13  ;;  %v1090_v47 = vrot.slane %v1076_v36, %v2929_v10 }
  0xba   : > { %v788_v32 = vsel %vm785_vm9, %v773_v29, %v583_v12 }
  0xbb   : > { %v345_v0 = vpop.permute.xlu1 %344  ;;  %511 = vrot.lane.b32.xlu0 %v2832_v56, %s2496_s24  ;;  %v859_v30 = vcombine.high %v851_v52, %v851_v52  ;;  %v876_v2 = vcombine.high %v868_v21, %v868_v21  ;;  %v875_v42 = vrot.slane %v861_v31, %v2929_v10 }
  0xbc   : > { %v715_v19 = vsel %vm710_vm4, %v2651_v16, %v345_v0 }
  0xbd   : > { %688 = vrot.lane.b32.xlu1 %v2937_v14, %s2500_s8  ;;  %v343_v22 = vpop.permute.xlu0 %342  ;;  %v1075_v41 = vcombine.low %v851_v52, %v859_v30  ;;  %v1092_v33 = vcombine.low %v868_v21, %v876_v2 }
  0xbf   : > { %v407_v9 = vpop.permute.xlu1 %406  ;;  %596 = vrot.lane.b32.xlu0 %v2826_v54, %s2498_s30  ;;  %v1083_v59 = vrot.slane %v1075_v41, %v2929_v10  ;;  %v1100_v60 = vrot.slane %v1092_v33, %v2929_v10 }
  0xc1   : > { %503 = vrot.lane.b32.xlu1 %v2752_v40, %s2496_s24  ;;  %v628_v1 = vpop.permute.xlu0 %627  ;;  %v1091_v63 = vcombine.low %v1083_v59, %v1090_v47 }
  0xc2   : > { %v803_v34 = vsel %vm800_vm10, %v788_v32, %v628_v1 }
  0xc3   : > { %v673_v20 = vpop.permute.xlu1 %672  ;;  %360 = vrot.lane.b32.xlu0 %v2839_v58, %s2495_s23 }
  0xc4   : > { %v818_v39 = vsel %vm815_vm11, %v803_v34, %v673_v20 }
  0xc5   : > { %v2962_v44 = vrot.slane %v818_v39, %v2929_v10  ;;  %594 = vrot.lane.b32.xlu1 %v2815_v53, %s2498_s30  ;;  %v409_v40 = vpop.permute.xlu0 %408  ;;  %v877_v0 = vcombine.high %v818_v39, %v818_v39 }
  0xc6   : > { %v730_v52 = vsel %vm725_vm5, %v715_v19, %v409_v40  ;;  %v298_v19 = vld [vmem:[%s2610_s12 + $0x80] sm:$0xff] }
  0xc7   : > { %v1093_v55 = vcombine.low %v875_v42, %v2962_v44  ;;  %v453_v57 = vpop.permute.xlu1 %452  ;;  %556 = vrot.lane.b32.xlu0 %v2851_v3, %s2497_s29  ;;  %v891_v2 = vrot.slane %v877_v0, %v2929_v10  ;;  %v892_v34 = vcombine.high %v2962_v44, %v2962_v44 }
  0xc8   : > { %v745_v23 = vsel %vm740_vm6, %v730_v52, %v453_v57 }
  0xc9   : > { %v1107_v61 = vrot.slane %v1093_v55, %v2929_v10  ;;  %424 = vrot.lane.b32.xlu1 %v2858_v7, %s2494_s14  ;;  %v451_v62 = vpop.permute.xlu0 %450  ;;  %v893_v44 = vcombine.high %v891_v2, %v891_v2  ;;  %v1109_v55 = vcombine.low %v892_v34, %v891_v2 }
  0xcb   : > { %v1108_v4 = vcombine.low %v1100_v60, %v1107_v61  ;;  %v498_v5 = vpop.permute.xlu1 %497  ;;  %641 = vrot.lane.b32.xlu0 %v2832_v56, %s2499_s6 }
  0xcd   : > { %600 = vrot.lane.b32.xlu1 %v2894_v26, %s2498_s30  ;;  %v496_v11 = vpop.permute.xlu0 %495  ;;  %v1299_v12 = vpack.c.bf16 %v1108_v4, %v1091_v63  ;;  %v1117_v4 = vrot.slane %v1109_v55, %v2929_v10 }
  0xcf   : > { %v543_v13 = vpop.permute.xlu1 %542  ;;  %548 = vrot.lane.b32.xlu0 %v2762_v43, %s2497_s29  ;;  %2244 = vmatmul.mubr.msk.bf16.vlgmr.msra.gmra.mxu0 %vm1326_vm12, %v1299_v12  ;;  %v714_v43 = vsel %vm710_vm4, %v2627_v6, %v343_v22 }
  0xd0   : > { %2247 = vmatprep.mubr.msk.bf16.mxu0 %vm2502_vm3, %v2501_v25  ;;  %v729_v16 = vsel %vm725_vm5, %v714_v43, %v407_v9  ;;  %v620_v43 = vrot.slane %v298_v19, 1 }
  0xd1   : > { %686 = vrot.lane.b32.xlu1 %v2851_v3, %s2500_s8  ;;  %v541_v18 = vpop.permute.xlu0 %540  ;;  %v744_v29 = vsel %vm740_vm6, %v729_v16, %v451_v62 }
  0xd3   : > { %v587_v8 = vpop.permute.xlu1 %586  ;;  %639 = vrot.lane.b32.xlu0 %v2839_v58, %s2499_s6  ;;  %v760_v58 = vsel %vm755_vm7, %v745_v23, %v498_v5 }
  0xd4   : > { %v775_v30 = vsel %vm770_vm8, %v760_v58, %v543_v13 }
  0xd5   : > { %468 = vrot.lane.b32.xlu1 %v2878_v15, %s2493_s13  ;;  %v585_v21 = vpop.permute.xlu0 %584  ;;  %v759_v15 = vsel %vm755_vm7, %v744_v29, %v496_v11  ;;  %v790_v22 = vsel %vm785_vm9, %v775_v30, %v587_v8 }
  0xd6   : > { %v774_v31 = vsel %vm770_vm8, %v759_v15, %v541_v18 }
  0xd7   : > { %v632_v24 = vpop.permute.xlu1 %631  ;;  %362 = vrot.lane.b32.xlu0 %v2832_v56, %s2495_s23  ;;  %v789_v32 = vsel %vm785_vm9, %v774_v31, %v585_v21 }
  0xd8   : > { %v805_v56 = vsel %vm800_vm10, %v790_v22, %v632_v24  ;;  %v665_v24 = vrot.slane %v298_v19, 2 }
  0xd9   : > { %645 = vrot.lane.b32.xlu1 %v2902_v35, %s2499_s6  ;;  %v630_v6 = vpop.permute.xlu0 %629 }
  0xda   : > { %v804_v36 = vsel %vm800_vm10, %v789_v32, %v630_v6 }
  0xdb   : > { %v677_v9 = vpop.permute.xlu1 %676  ;;  %592 = vrot.lane.b32.xlu0 %v2782_v46, %s2498_s30 }
  0xdc   : > { %v3013_v1 = vsel %vm815_vm11, %v805_v56, %v677_v9 }
  0xdd   : > { %v917_v20 = vrot.slane %v3013_v1, %v2929_v10  ;;  %426 = vrot.lane.b32.xlu1 %v2851_v3, %s2494_s14  ;;  %v675_v39 = vpop.permute.xlu0 %674 }
  0xde   : > { %v819_v41 = vsel %vm815_vm11, %v804_v36, %v675_v39 }
  0xdf   : > { %v925_v42 = vcombine.high %v917_v20, %v917_v20  ;;  %v894_v33 = vcombine.high %v819_v41, %v819_v41  ;;  %v901_v40 = vrot.slane %v819_v41, %v2929_v10  ;;  %v3024_v47 = vpop.permute.xlu1 %348  ;;  %684 = vrot.lane.b32.xlu0 %v2858_v7, %s2500_s8 }
  0xe1   : > { %v1127_v57 = vcombine.low %v917_v20, %v925_v42  ;;  %v908_v59 = vrot.slane %v894_v33, %v2929_v10  ;;  %v909_v60 = vcombine.high %v901_v40, %v901_v40  ;;  %637 = vrot.lane.b32.xlu1 %v2788_v48, %s2499_s6  ;;  %v347_v3 = vpop.permute.xlu0 %346  ;;  %v1110_v61 = vcombine.low %v893_v44, %v901_v40 }
  0xe2   : > { %v716_v39 = vsel %vm710_vm4, %v2655_v17, %v347_v3  ;;  %v910_v17 = vcombine.high %v3013_v1, %v3013_v1 }
  0xe3   : > { %v1126_v62 = vcombine.low %v909_v60, %v908_v59  ;;  %v3031_v63 = vpop.permute.xlu1 %412  ;;  %513 = vrot.lane.b32.xlu0 %v2914_v49, %s2496_s24  ;;  %v1124_v7 = vrot.slane %v1110_v61, %v2929_v10  ;;  %v1141_v5 = vrot.slane %v1127_v57, %v2929_v10  ;;  %v299_v49 = vld [vmem:[%s2610_s12 + $0x88] sm:$0xff]  ;;  %s264_s12 = smul.u32 7, %s2475_s18 }
  0xe4   : > { %v621_v21 = vrot.slane %v299_v49, 1  ;;  %v666_v0 = vrot.slane %v299_v49, 2 }
  0xe5   : > { %v1134_v11 = vrot.slane %v1126_v62, %v2929_v10  ;;  %470 = vrot.lane.b32.xlu1 %v2894_v26, %s2493_s13  ;;  %v411_v48 = vpop.permute.xlu0 %410  ;;  %v1125_v12 = vcombine.low %v1117_v4, %v1124_v7  ;;  %p267_p13 = scmp.lt.s32.totalorder %s264_s12, 13  ;;  %s2277_s13 = smul.u32 28, %s2604_s7 }
  0xe6   : > { %v622_v16 = vsel %vm314_vm0, %v620_v43, %v621_v21  ;;  %v667_v30 = vsel %vm378_vm1, %v665_v24, %v666_v0  ;;  %v731_v42 = vsel %vm725_vm5, %v716_v39, %v411_v48 }
  0xe7   : > { %v457_v13 = vpop.permute.xlu1 %456  ;;  %690 = vrot.lane.b32.xlu0 %v2922_v51, %s2500_s8  ;;  %v1142_v18 = vcombine.low %v1134_v11, %v1141_v5  ;;  %s3446_s12 = smov (!%p267_p13, %s264_s12), 13 }
  0xe8   : > { %s2208_s14 = sshll.u32 %s3446_s12, 1 }
  0xe9   : > { %682 = vrot.lane.b32.xlu1 %v2794_v50, %s2500_s8  ;;  %v455_v8 = vpop.permute.xlu0 %454  ;;  %v1300_v52 = vpack.c.bf16 %v1142_v18, %v1125_v12  ;;  %s274_s23 = sadd.s32 %s2277_s13, %s2208_s14 }
  0xea   : > { %v746_v33 = vsel %vm740_vm6, %v731_v42, %v455_v8  ;;  %s2209_s7 = sshll.u32 %s274_s23, 3 }
  0xeb   : > { %v500_v23 = vpop.permute.xlu1 %499  ;;  %558 = vrot.lane.b32.xlu0 %v2937_v14, %s2497_s29  ;;  %2248 = vmatmul.mubr.msk.bf16.gmra.mxu0 %vm1326_vm12, %v1300_v52 }
  0xec   : > { %2251 = vmatprep.mubr.msk.bf16.mxu0 %vm2502_vm3, %v2501_v25  ;;  %v761_v55 = vsel %vm755_vm7, %v746_v33, %v500_v23 }
  0xed   : > { %602 = vrot.lane.b32.xlu1 %v298_v19, %s2498_s30  ;;  %v357_v26 = vpop.permute.xlu0 %356 }
  0xee   : > { %v721_v50 = vsel %vm710_vm4, %v2779_v45, %v357_v26 }
  0xef   : > { %v421_v58 = vpop.permute.xlu1 %420  ;;  %515 = vrot.lane.b32.xlu0 %v2902_v35, %s2496_s24 }
  0xf0   : > { %v736_v14 = vsel %vm725_vm5, %v721_v50, %v421_v58 }
  0xf1   : > { %647 = vrot.lane.b32.xlu1 %v622_v16, %s2499_s6  ;;  %v502_v29 = vpop.permute.xlu0 %501 }
  0xf3   : > { %v547_v6 = vpop.permute.xlu1 %546  ;;  %560 = vrot.lane.b32.xlu0 %v2922_v51, %s2497_s29 }
  0xf5   : > { %692 = vrot.lane.b32.xlu1 %v667_v30, %s2500_s8  ;;  %v545_v45 = vpop.permute.xlu0 %544 }
  0xf6   : > { %v776_v59 = vsel %vm770_vm8, %v761_v55, %v545_v45 }
  0xf7   : > { %v465_v15 = vpop.permute.xlu1 %464  ;;  %604 = vrot.lane.b32.xlu0 %v299_v49, %s2498_s30  ;;  %s3250_s30 = scalar_lea.vmem %s3427_s2, %s2209_s7 }
  0xf8   : > { %v751_v22 = vsel %vm740_vm6, %v736_v14, %v465_v15 }
  0xf9   : > { %v355_v35 = vpop.permute.xlu0 %354  ;;  %694 = vrot.lane.b32.xlu1 %v666_v0, %s2500_s8  ;;  %s3339_s8 = scalar_lea.vmem [#allocation4], %s2687_s11 }
  0xfa   : > { %v720_v9 = vsel %vm710_vm4, %v2747_v38, %v355_v35  ;;  %v717_v38 = vsel %vm710_vm4, %v2693_v27, %v3024_v47 }
  0xfb   : > { %v591_v31 = vpop.permute.xlu1 %590  ;;  %649 = vrot.lane.b32.xlu0 %v621_v21, %s2499_s6  ;;  %v732_v61 = vsel %vm725_vm5, %v717_v38, %v3031_v63  ;;  %s248_s6 = scalar_lea.vmem [#allocation2], %s2687_s11 }
  0xfc   : > { %v747_v62 = vsel %vm740_vm6, %v732_v61, %v457_v13 }
  0xfd   : > { %v589_v56 = vpop.permute.xlu0 %588  ;;  %v762_v1 = vsel %vm755_vm7, %v747_v62, %v502_v29 }
  0xfe   : > { %v791_v27 = vsel %vm785_vm9, %v776_v59, %v589_v56  ;;  %v777_v12 = vsel %vm770_vm8, %v762_v1, %v547_v6 }
  0xff   : > { %v419_v2 = vpop.permute.xlu1 %418  ;;  %v792_v13 = vsel %vm785_vm9, %v777_v12, %v591_v31 }
 0x100   : > { %v735_v51 = vsel %vm725_vm5, %v720_v9, %v419_v2 }
 0x101   : > { %v353_v32 = vpop.permute.xlu0 %352 }
 0x102   : > { %v719_v60 = vsel %vm710_vm4, %v2744_v37, %v353_v32  ;;  %v924_v37 = vrot.slane %v910_v17, %v2929_v10 }
 0x103   : > { %v634_v34 = vpop.permute.xlu1 %633 }
 0x104   : > { %v806_v7 = vsel %vm800_vm10, %v791_v27, %v634_v34  ;;  %v926_v8 = vcombine.high %v924_v37, %v924_v37 }
 0x105   : > { %v510_v36 = vpop.permute.xlu0 %509 }
 0x106   : > { %v766_v20 = vsel %vm755_vm7, %v751_v22, %v510_v36  ;;  %v1143_v0 = vcombine.low %v924_v37, %v926_v8 }
 0x107   : > { %v3074_v41 = vpop.permute.xlu1 %358 }
 0x108   : > { %v1151_v22 = vrot.slane %v1143_v0, %v2929_v10 }
 0x109   : > { %v636_v40 = vpop.permute.xlu0 %635 }
 0x10a   : > { %v807_v52 = vsel %vm800_vm10, %v792_v13, %v636_v40 }
 0x10b   : > { %v463_v44 = vpop.permute.xlu1 %462 }
 0x10c   : > { %v3083_v57 = vsel %vm740_vm6, %v735_v51, %v463_v44 }
 0x10d   : > { %v417_v3 = vpop.permute.xlu0 %416 }
 0x10e   : > { %v3094_v47 = vsel %vm725_vm5, %v719_v60, %v417_v3 }
 0x10f   : > { %v679_v4 = vpop.permute.xlu1 %678 }
 0x110   : > { %v821_v5 = vsel %vm815_vm11, %v806_v7, %v679_v4 }
 0x111   : > { %v934_v11 = vrot.slane %v821_v5, %v2929_v10  ;;  %v555_v48 = vpop.permute.xlu0 %554  ;;  %v927_v18 = vcombine.high %v821_v5, %v821_v5 }
 0x112   : > { %v781_v63 = vsel %vm770_vm8, %v766_v20, %v555_v48 }
 0x113   : > { %v942_v19 = vcombine.high %v934_v11, %v934_v11  ;;  %v3104_v49 = vpop.permute.xlu1 %350  ;;  %v941_v23 = vrot.slane %v927_v18, %v2929_v10 }
 0x115   : > { %v681_v43 = vpop.permute.xlu0 %680  ;;  %v1144_v26 = vcombine.low %v934_v11, %v942_v19 }
 0x116   : > { %v822_v21 = vsel %vm815_vm11, %v807_v52, %v681_v43 }
 0x117   : > { %v943_v24 = vcombine.high %v822_v21, %v822_v21  ;;  %v950_v50 = vrot.slane %v822_v21, %v2929_v10  ;;  %v461_v16 = vpop.permute.xlu1 %460  ;;  %v1158_v6 = vrot.slane %v1144_v26, %v2929_v10 }
 0x119   : > { %v3112_v58 = vrot.slane %v943_v24, %v2929_v10  ;;  %v958_v14 = vcombine.high %v950_v50, %v950_v50  ;;  %v1160_v29 = vcombine.low %v941_v23, %v950_v50  ;;  %v3114_v30 = vpop.permute.xlu0 %422  ;;  %v1159_v9 = vcombine.low %v1151_v22, %v1158_v6 }
 0x11b   : > { %v1161_v45 = vcombine.low %v958_v14, %v3112_v58  ;;  %v599_v15 = vpop.permute.xlu1 %598  ;;  %v1168_v35 = vrot.slane %v1160_v29, %v2929_v10  ;;  %v749_v14 = vsel %vm740_vm6, %v3094_v47, %v461_v16  ;;  %v722_v47 = vsel %vm710_vm4, %v2782_v46, %v3074_v41 }
 0x11c   : > { %v796_v1 = vsel %vm785_vm9, %v781_v63, %v599_v15 }
 0x11d   : > { %v1175_v31 = vrot.slane %v1161_v45, %v2929_v10  ;;  %v508_v56 = vpop.permute.xlu0 %507 }
 0x11e   : > { %v765_v62 = vsel %vm755_vm7, %v3083_v57, %v508_v56 }
 0x11f   : > { %v1176_v2 = vcombine.low %v1168_v35, %v1175_v31  ;;  %v467_v51 = vpop.permute.xlu1 %466 }
 0x121   : > { %v415_v32 = vpop.permute.xlu0 %414  ;;  %v1301_v34 = vpack.c.bf16 %v1176_v2, %v1159_v9 }
 0x123   : > { %v553_v36 = vpop.permute.xlu1 %552  ;;  %2252 = vmatmul.mubr.msk.bf16.gmra.mxu0 %vm1326_vm12, %v1301_v34 }
 0x124   : > { %2255 = vmatprep.mubr.msk.bf16.mxu0 %vm2502_vm3, %v2501_v25  ;;  %v780_v7 = vsel %vm770_vm8, %v765_v62, %v553_v36  ;;  %v737_v36 = vsel %vm725_vm5, %v722_v47, %v3114_v30 }
 0x125   : > { %v506_v20 = vpop.permute.xlu0 %505 }
 0x126   : > { %v764_v45 = vsel %vm755_vm7, %v749_v14, %v506_v20  ;;  %v718_v20 = vsel %vm710_vm4, %v2699_v28, %v3104_v49 }
 0x127   : > { %v459_v39 = vpop.permute.xlu1 %458 }
 0x129   : > { %v644_v42 = vpop.permute.xlu0 %643 }
 0x12a   : > { %v811_v37 = vsel %vm800_vm10, %v796_v1, %v644_v42  ;;  %v752_v42 = vsel %vm740_vm6, %v737_v36, %v467_v51 }
 0x12b   : > { %v551_v33 = vpop.permute.xlu1 %550 }
 0x12c   : > { %v779_v15 = vsel %vm770_vm8, %v764_v45, %v551_v33 }
 0x12d   : > { %v512_v40 = vpop.permute.xlu0 %511 }
 0x12f   : > { %v689_v38 = vpop.permute.xlu1 %688 }
 0x130   : > { %v826_v12 = vsel %vm815_vm11, %v811_v37, %v689_v38  ;;  %v733_v38 = vsel %vm725_vm5, %v718_v20, %v415_v32 }
 0x131   : > { %v597_v44 = vpop.permute.xlu0 %596  ;;  %v1016_v8 = vrot.slane %v826_v12, %v2929_v10  ;;  %v1009_v16 = vcombine.high %v826_v12, %v826_v12  ;;  %v748_v46 = vsel %vm740_vm6, %v733_v38, %v459_v39 }
 0x132   : > { %v795_v5 = vsel %vm785_vm9, %v780_v7, %v597_v44  ;;  %v767_v44 = vsel %vm755_vm7, %v752_v42, %v512_v40 }
 0x133   : > { %v504_v55 = vpop.permute.xlu1 %503  ;;  %v1023_v41 = vrot.slane %v1009_v16, %v2929_v10 }
 0x134   : > { %v763_v7 = vsel %vm755_vm7, %v748_v46, %v504_v55 }
 0x135   : > { %v3124_v17 = vpop.permute.xlu0 %360 }
 0x137   : > { %v595_v59 = vpop.permute.xlu1 %594 }
 0x138   : > { %v794_v35 = vsel %vm785_vm9, %v779_v15, %v595_v59 }
 0x139   : > { %v557_v60 = vpop.permute.xlu0 %556 }
 0x13a   : > { %v782_v30 = vsel %vm770_vm8, %v767_v44, %v557_v60 }
 0x13b   : > { %v3126_v3 = vpop.permute.xlu1 %424 }
 0x13d   : > { %v642_v61 = vpop.permute.xlu0 %641 }
 0x13e   : > { %v810_v11 = vsel %vm800_vm10, %v795_v5, %v642_v61  ;;  %v1024_v61 = vcombine.high %v1016_v8, %v1016_v8 }
 0x13f   : > { %v601_v27 = vpop.permute.xlu1 %600 }
 0x140   : > { %v797_v28 = vsel %vm785_vm9, %v782_v30, %v601_v27  ;;  %v1228_v37 = vcombine.low %v1024_v61, %v1023_v41 }
 0x141   : > { %v549_v4 = vpop.permute.xlu0 %548 }
 0x142   : > { %v778_v51 = vsel %vm770_vm8, %v763_v7, %v549_v4 }
 0x143   : > { %v687_v48 = vpop.permute.xlu1 %686 }
 0x144   : > { %v825_v18 = vsel %vm815_vm11, %v810_v11, %v687_v48  ;;  %v1025_v11 = vcombine.high %v1023_v41, %v1023_v41 }
 0x145   : > { %v993_v19 = vcombine.high %v825_v18, %v825_v18  ;;  %v1000_v13 = vrot.slane %v825_v18, %v2929_v10  ;;  %v640_v57 = vpop.permute.xlu0 %639  ;;  %v959_v18 = vcombine.high %v3112_v58, %v3112_v58 }
 0x146   : > { %v809_v31 = vsel %vm800_vm10, %v794_v35, %v640_v57 }
 0x147   : > { %v1007_v52 = vrot.slane %v993_v19, %v2929_v10  ;;  %v1008_v63 = vcombine.high %v1000_v13, %v1000_v13  ;;  %v3140_v43 = vpop.permute.xlu1 %468 }
 0x149   : > { %v1211_v21 = vcombine.low %v1000_v13, %v1008_v63  ;;  %v1212_v23 = vcombine.low %v1007_v52, %v1016_v8  ;;  %v3142_v26 = vpop.permute.xlu0 %362  ;;  %v723_v13 = vsel %vm710_vm4, %v2815_v53, %v3124_v17  ;;  %v1236_v63 = vrot.slane %v1228_v37, %v2929_v10 }
 0x14b   : > { %v1219_v24 = vrot.slane %v1211_v21, %v2929_v10  ;;  %v1226_v50 = vrot.slane %v1212_v23, %v2929_v10  ;;  %v646_v0 = vpop.permute.xlu1 %645  ;;  %v738_v21 = vsel %vm725_vm5, %v723_v13, %v3126_v3 }
 0x14c   : > { %v812_v32 = vsel %vm800_vm10, %v797_v28, %v646_v0  ;;  %v753_v53 = vsel %vm740_vm6, %v738_v21, %v3140_v43 }
 0x14d   : > { %v3148_v29 = vcombine.low %v1219_v24, %v1226_v50  ;;  %v593_v6 = vpop.permute.xlu0 %592 }
 0x14e   : > { %v793_v1 = vsel %vm785_vm9, %v778_v51, %v593_v6 }
 0x14f   : > { %v3152_v22 = vpop.permute.xlu1 %426 }
 0x151   : > { %v685_v56 = vpop.permute.xlu0 %684 }
 0x152   : > { %v824_v9 = vsel %vm815_vm11, %v809_v31, %v685_v56 }
 0x153   : > { %v976_v2 = vcombine.high %v824_v9, %v824_v9  ;;  %v638_v34 = vpop.permute.xlu1 %637  ;;  %v983_v49 = vrot.slane %v824_v9, %v2929_v10 }
 0x154   : > { %v808_v60 = vsel %vm800_vm10, %v793_v1, %v638_v34 }
 0x155   : > { %v514_v33 = vpop.permute.xlu0 %513  ;;  %v990_v59 = vrot.slane %v976_v2, %v2929_v10  ;;  %v991_v48 = vcombine.high %v983_v49, %v983_v49 }
 0x156   : > { %v768_v15 = vsel %vm755_vm7, %v753_v53, %v514_v33 }
 0x157   : > { %v471_v62 = vpop.permute.xlu1 %470  ;;  %v992_v39 = vcombine.high %v990_v59, %v990_v59  ;;  %v1194_v50 = vcombine.low %v983_v49, %v991_v48 }
 0x159   : > { %v691_v40 = vpop.permute.xlu0 %690  ;;  %v1195_v57 = vcombine.low %v990_v59, %v992_v39  ;;  %v1202_v9 = vrot.slane %v1194_v50, %v2929_v10 }
 0x15a   : > { %v827_v5 = vsel %vm815_vm11, %v812_v32, %v691_v40 }
 0x15b   : > { %v3181_v55 = vrot.slane %v827_v5, %v2929_v10  ;;  %v683_v27 = vpop.permute.xlu1 %682  ;;  %v1209_v45 = vrot.slane %v1195_v57, %v2929_v10  ;;  %v1026_v30 = vcombine.high %v827_v5, %v827_v5 }
 0x15c   : > { %v823_v12 = vsel %vm815_vm11, %v808_v60, %v683_v27 }
 0x15d   : > { %v1229_v4 = vcombine.low %v1025_v11, %v3181_v55  ;;  %v559_v19 = vpop.permute.xlu0 %558  ;;  %v960_v8 = vcombine.high %v823_v12, %v823_v12  ;;  %v967_v52 = vrot.slane %v823_v12, %v2929_v10  ;;  %v1210_v2 = vcombine.low %v1202_v9, %v1209_v45 }
 0x15e   : > { %v783_v3 = vsel %vm770_vm8, %v768_v15, %v559_v19  ;;  %v1040_v32 = vrot.slane %v1026_v30, %v2929_v10  ;;  %v1041_v40 = vcombine.high %v3181_v55, %v3181_v55 }
 0x15f   : > { %v1243_v23 = vrot.slane %v1229_v4, %v2929_v10  ;;  %v603_v24 = vpop.permute.xlu1 %602  ;;  %v974_v58 = vrot.slane %v960_v8, %v2929_v10  ;;  %v975_v0 = vcombine.high %v967_v52, %v967_v52  ;;  %v1177_v14 = vcombine.low %v959_v18, %v967_v52 }
 0x160   : > { %v798_v36 = vsel %vm785_vm9, %v783_v3, %v603_v24  ;;  %v1245_v60 = vcombine.low %v1041_v40, %v1040_v32 }
 0x161   : > { %v1244_v17 = vcombine.low %v1236_v63, %v1243_v23  ;;  %v516_v6 = vpop.permute.xlu0 %515  ;;  %v1178_v35 = vcombine.low %v975_v0, %v974_v58  ;;  %v1185_v47 = vrot.slane %v1177_v14, %v2929_v10 }
 0x162   : > { %v1253_v4 = vrot.slane %v1245_v60, %v2929_v10 }
 0x163   : > { %v648_v31 = vpop.permute.xlu1 %647  ;;  %v1303_v56 = vpack.c.bf16 %v1244_v17, %v3148_v29  ;;  %v1192_v16 = vrot.slane %v1178_v35, %v2929_v10  ;;  %v724_v29 = vsel %vm710_vm4, %v2826_v54, %v3142_v26 }
 0x164   : > { %v813_v20 = vsel %vm800_vm10, %v798_v36, %v648_v31  ;;  %v739_v44 = vsel %vm725_vm5, %v724_v29, %v3152_v22 }
 0x165   : > { %2260 = vmatmul.mubr.msk.bf16.vlgmr.msra.gmra.mxu1 %vm1326_vm12, %v1303_v56  ;;  %v561_v43 = vpop.permute.xlu0 %560  ;;  %v1193_v34 = vcombine.low %v1185_v47, %v1192_v16  ;;  %v754_v61 = vsel %vm740_vm6, %v739_v44, %v471_v62 }
 0x166   : > { %2263 = vmatprep.mubr.msk.bf16.mxu1 %vm2502_vm3, %v2501_v25  ;;  %v769_v7 = vsel %vm755_vm7, %v754_v61, %v516_v6 }
 0x167   : > { %v693_v42 = vpop.permute.xlu1 %692  ;;  %v1302_v38 = vpack.c.bf16 %v1210_v2, %v1193_v34  ;;  %v784_v54 = vsel %vm770_vm8, %v769_v7, %v561_v43 }
 0x168   : > { %v828_v33 = vsel %vm815_vm11, %v813_v20, %v693_v42 }
 0x169   : > { %v1042_v59 = vcombine.high %v828_v33, %v828_v33  ;;  %v1049_v46 = vrot.slane %v828_v33, %v2929_v10  ;;  %v605_v41 = vpop.permute.xlu0 %604  ;;  %2256 = vmatmul.mubr.msk.bf16.gmra.mxu0 %vm1326_vm12, %v1302_v38 }
 0x16a   : > { %v799_v51 = vsel %vm785_vm9, %v784_v54, %v605_v41 }
 0x16b   : > { %v1056_v28 = vrot.slane %v1042_v59, %v2929_v10  ;;  %v1057_v26 = vcombine.high %v1049_v46, %v1049_v46  ;;  %v695_v49 = vpop.permute.xlu1 %694 }
 0x16d   : > { %v650_v22 = vpop.permute.xlu0 %649  ;;  %v1058_v62 = vcombine.high %v1056_v28, %v1056_v28  ;;  %v1246_v5 = vcombine.low %v1049_v46, %v1057_v26 }
 0x16e   : > { %v814_v1 = vsel %vm800_vm10, %v799_v51, %v650_v22 }
 0x16f   : > { %v829_v39 = vsel %vm815_vm11, %v814_v1, %v695_v49  ;;  %v1262_v11 = vcombine.low %v1056_v28, %v1058_v62  ;;  %v1260_v48 = vrot.slane %v1246_v5, %v2929_v10 }
 0x170   : > { %v1066_v37 = vrot.slane %v829_v39, %v2929_v10  ;;  %v1059_v18 = vcombine.high %v829_v39, %v829_v39 }
 0x171   : > { %v1270_v55 = vrot.slane %v1262_v11, %v2929_v10  ;;  %v1261_v13 = vcombine.low %v1253_v4, %v1260_v48 }
 0x172   : > { %v1074_v27 = vcombine.high %v1066_v37, %v1066_v37  ;;  %v1073_v8 = vrot.slane %v1059_v18, %v2929_v10 }
 0x174   : > { %v1263_v12 = vcombine.low %v1066_v37, %v1074_v27  ;;  %v1285_v63 = vrot.slane %v1073_v8, %v2929_v10 }
 0x176   : > { %v1277_v19 = vrot.slane %v1263_v12, %v2929_v10  ;;  %v1305_v21 = vpack.c.bf16 %v1285_v63, %v1285_v63 }
 0x178   : > { %v1278_v57 = vcombine.low %v1270_v55, %v1277_v19 }
 0x17a   : > { %v1304_v52 = vpack.c.bf16 %v1278_v57, %v1261_v13 }
 0x17c   : > { %2264 = vmatmul.mubr.msk.bf16.gmra.mxu1 %vm1326_vm12, %v1304_v52 }
 0x17d   : > { %2267 = vmatprep.mubr.msk.bf16.mxu1 %vm2502_vm3, %v2501_v25 }
 0x184   : > { %2268 = vmatmul.mubr.msk.bf16.gmra.mxu1 %vm1326_vm12, %v1305_v21 }
 0x18f   : > { %v1386_v23 = vpop.f32.mrf.mxu0 }
 0x190   : > { %v1453_v24 = vcombine.high %v1386_v23, %v1386_v23  ;;  %v1460_v50 = vrot.slane %v1386_v23, %v2929_v10  ;;  %v1942_v15 = vmul.f32 %v1386_v23, %v1386_v23 }
 0x191   : > { %v2245_v58 = vpop.f32.mrf.mxu0 }
 0x192   : > { %v1467_v0 = vrot.slane %v1453_v24, %v2929_v10  ;;  %v1468_v14 = vcombine.high %v1460_v50, %v1460_v50 }
 0x193   : > { %v1389_v25 = vpop.f32.mrf.mxu0 }
 0x194   : > { %v1469_v53 = vcombine.high %v1467_v0, %v1467_v0  ;;  %v1664_v17 = vcombine.low %v1460_v50, %v1468_v14  ;;  %v1470_v6 = vcombine.high %v1389_v25, %v1389_v25  ;;  %v1477_v45 = vrot.slane %v1389_v25, %v2929_v10 }
 0x195   : > { %v1923_v35 = vadd.f32 %v1389_v25, %v1386_v23  ;;  %v1943_v3 = vmul.f32 %v1389_v25, %v1389_v25  ;;  %v2246_v31 = vpop.f32.mrf.mxu0 }
 0x196   : > { %v1665_v56 = vcombine.low %v1467_v0, %v1469_v53  ;;  %v1484_v9 = vrot.slane %v1470_v6, %v2929_v10  ;;  %v1485_v47 = vcombine.high %v1477_v45, %v1477_v45  ;;  %v1672_v43 = vrot.slane %v1664_v17, %v2929_v10 }
 0x197   : > { %v1955_v16 = vadd.f32 %v1943_v3, %v1942_v15 }
 0x198   : > { %v1679_v2 = vrot.slane %v1665_v56, %v2929_v10  ;;  %v1681_v34 = vcombine.low %v1477_v45, %v1485_v47  ;;  %v1695_v42 = vrot.slane %v1484_v9, %v2929_v10  ;;  %v1486_v38 = vcombine.high %v1484_v9, %v1484_v9 }
 0x19a   : > { %v1680_v36 = vcombine.low %v1672_v43, %v1679_v2  ;;  %v1688_v20 = vrot.slane %v1681_v34, %v2929_v10 }
 0x19c   : > { %1909 = vst [vmem:[%s3250_s30] sm:$0xff] %v1680_v36  ;;  %v1696_v29 = vcombine.low %v1688_v20, %v1695_v42 }
 0x19e   : > { %1910 = vst [vmem:[%s3250_s30 + $0x8] sm:$0x3f] %v1696_v29 }
 0x1ab   : > { %v1394_v33 = vpop.f32.mrf.mxu0 }
 0x1ac   : > { %v1487_v44 = vcombine.high %v1394_v33, %v1394_v33  ;;  %v1494_v59 = vrot.slane %v1394_v33, %v2929_v10  ;;  %v1924_v46 = vadd.f32 %v1923_v35, %v1394_v33  ;;  %v1944_v41 = vmul.f32 %v1394_v33, %v1394_v33 }
 0x1ad   : > { %v2249_v61 = vpop.f32.mrf.mxu0 }
 0x1ae   : > { %v1501_v30 = vrot.slane %v1487_v44, %v2929_v10  ;;  %v1502_v7 = vcombine.high %v1494_v59, %v1494_v59  ;;  %v1697_v28 = vcombine.low %v1486_v38, %v1494_v59  ;;  %v1956_v54 = vadd.f32 %v1955_v16, %v1944_v41 }
 0x1af   : > { %v1397_v26 = vpop.f32.mrf.mxu0 }
 0x1b0   : > { %v1698_v49 = vcombine.low %v1502_v7, %v1501_v30  ;;  %v1503_v51 = vcombine.high %v1501_v30, %v1501_v30  ;;  %v1511_v22 = vrot.slane %v1397_v26, %v2929_v10  ;;  %v1925_v32 = vadd.f32 %v1924_v46, %v1397_v26 }
 0x1b1   : > { %v1945_v40 = vmul.f32 %v1397_v26, %v1397_v26  ;;  %v2250_v62 = vpop.f32.mrf.mxu0  ;;  %v1705_v1 = vrot.slane %v1697_v28, %v2929_v10  ;;  %v1504_v4 = vcombine.high %v1397_v26, %v1397_v26 }
 0x1b2   : > { %v1712_v39 = vrot.slane %v1698_v49, %v2929_v10  ;;  %v1519_v5 = vcombine.high %v1511_v22, %v1511_v22  ;;  %v1714_v37 = vcombine.low %v1503_v51, %v1511_v22 }
 0x1b3   : > { %v1957_v60 = vadd.f32 %v1956_v54, %v1945_v40  ;;  %v1518_v55 = vrot.slane %v1504_v4, %v2929_v10 }
 0x1b4   : > { %v1713_v11 = vcombine.low %v1705_v1, %v1712_v39  ;;  %v1721_v27 = vrot.slane %v1714_v37, %v2929_v10  ;;  %v1728_v48 = vrot.slane %v1519_v5, %v2929_v10 }
 0x1b5   : > { %v1520_v18 = vcombine.high %v1518_v55, %v1518_v55 }
 0x1b6   : > { %1911 = vst [vmem:[%s3250_s30 + $0x10] sm:$0xff] %v1713_v11  ;;  %v1729_v12 = vcombine.low %v1721_v27, %v1728_v48 }
 0x1b7   : > { %v1730_v21 = vcombine.low %v1518_v55, %v1520_v18 }
 0x1b8   : > { %1912 = vst [vmem:[%s3250_s30 + $0x18] sm:$0x3f] %v1729_v12 }
 0x1b9   : > { %v1738_v45 = vrot.slane %v1730_v21, %v2929_v10 }
 0x1e3   : > { %v1402_v19 = vpop.f32.mrf.mxu0 }
 0x1e4   : > { %v1521_v13 = vcombine.high %v1402_v19, %v1402_v19  ;;  %v1528_v57 = vrot.slane %v1402_v19, %v2929_v10  ;;  %v1926_v8 = vadd.f32 %v1925_v32, %v1402_v19  ;;  %v1946_v52 = vmul.f32 %v1402_v19, %v1402_v19 }
 0x1e5   : > { %v2253_v63 = vpop.f32.mrf.mxu0 }
 0x1e6   : > { %v1535_v23 = vrot.slane %v1521_v13, %v2929_v10  ;;  %v1536_v24 = vcombine.high %v1528_v57, %v1528_v57  ;;  %v1958_v50 = vadd.f32 %v1957_v60, %v1946_v52 }
 0x1e7   : > { %v1405_v58 = vpop.f32.mrf.mxu0 }
 0x1e8   : > { %v1537_v0 = vcombine.high %v1535_v23, %v1535_v23  ;;  %v1731_v14 = vcombine.low %v1528_v57, %v1536_v24  ;;  %v1545_v25 = vrot.slane %v1405_v58, %v2929_v10  ;;  %v3269_v53 = vadd.f32 %v1926_v8, %v1405_v58 }
 0x1e9   : > { %v1947_v17 = vmul.f32 %v1405_v58, %v1405_v58  ;;  %v2254_v6 = vpop.f32.mrf.mxu0  ;;  %v1538_v16 = vcombine.high %v1405_v58, %v1405_v58 }
 0x1ea   : > { %v1745_v15 = vrot.slane %v1731_v14, %v2929_v10  ;;  %v1747_v35 = vcombine.low %v1535_v23, %v1537_v0  ;;  %v1761_v9 = vrot.slane %v1545_v25, %v2929_v10  ;;  %v1553_v34 = vcombine.high %v1545_v25, %v1545_v25 }
 0x1eb   : > { %v3273_v3 = vadd.f32 %v1958_v50, %v1947_v17  ;;  %v1552_v2 = vrot.slane %v1538_v16, %v2929_v10 }
 0x1ec   : > { %v1746_v31 = vcombine.low %v1738_v45, %v1745_v15  ;;  %v1754_v56 = vrot.slane %v1747_v35, %v2929_v10 }
 0x1ed   : > { %v1763_v44 = vcombine.low %v1553_v34, %v1552_v2  ;;  %v1554_v30 = vcombine.high %v1552_v2, %v1552_v2 }
 0x1ee   : > { %1913 = vst [vmem:[%s3250_s30 + $0x20] sm:$0xff] %v1746_v31  ;;  %v1762_v47 = vcombine.low %v1754_v56, %v1761_v9 }
 0x1ef   : > { %v1771_v39 = vrot.slane %v1763_v44, %v2929_v10 }
 0x1f0   : > { %1914 = vst [vmem:[%s3250_s30 + $0x28] sm:$0x3f] %v1762_v47 }
 0x225   : > { %v3279_v43 = vpop.f32.mrf.mxu1 }
 0x226   : > { %v1589_v36 = vcombine.high %v3279_v43, %v3279_v43  ;;  %v1596_v20 = vrot.slane %v3279_v43, %v2929_v10  ;;  %v1950_v2 = vmul.f32 %v3279_v43, %v3279_v43 }
 0x227   : > { %v2261_v42 = vpop.f32.mrf.mxu1 }
 0x228   : > { %v1603_v29 = vrot.slane %v1589_v36, %v2929_v10  ;;  %v1604_v33 = vcombine.high %v1596_v20, %v1596_v20 }
 0x229   : > { %v3287_v38 = vpop.f32.mrf.mxu1  ;;  %v1410_v46 = vpop.f32.mrf.mxu0 }
 0x22a   : > { %v1813_v59 = vcombine.low %v1596_v20, %v1604_v33  ;;  %v1605_v41 = vcombine.high %v1603_v29, %v1603_v29  ;;  %v1606_v61 = vcombine.high %v3287_v38, %v3287_v38  ;;  %v1555_v7 = vcombine.high %v1410_v46, %v1410_v46 }
 0x22b   : > { %v1562_v28 = vrot.slane %v1410_v46, %v2929_v10  ;;  %v2262_v54 = vpop.f32.mrf.mxu1  ;;  %v1827_v49 = vrot.slane %v1603_v29, %v2929_v10  ;;  %v1613_v51 = vrot.slane %v3287_v38, %v2929_v10  ;;  %v2257_v32 = vpop.f32.mrf.mxu0  ;;  %v1948_v14 = vmul.f32 %v1410_v46, %v1410_v46 }
 0x22c   : > { %v1820_v26 = vrot.slane %v1813_v59, %v2929_v10  ;;  %v1620_v22 = vrot.slane %v1606_v61, %v2929_v10  ;;  %v1569_v40 = vrot.slane %v1555_v7, %v2929_v10  ;;  %v1928_v17 = vadd.f32 %v3269_v53, %v1410_v46 }
 0x22d   : > { %v1570_v62 = vcombine.high %v1562_v28, %v1562_v28  ;;  %v1764_v1 = vcombine.low %v1554_v30, %v1562_v28  ;;  %v1621_v37 = vcombine.high %v1613_v51, %v1613_v51  ;;  %v1829_v60 = vcombine.low %v1605_v41, %v1613_v51  ;;  %v1413_v11 = vpop.f32.mrf.mxu0 }
 0x22e   : > { %v1828_v5 = vcombine.low %v1820_v26, %v1827_v49  ;;  %v1571_v27 = vcombine.high %v1569_v40, %v1569_v40  ;;  %v1572_v4 = vcombine.high %v1413_v11, %v1413_v11  ;;  %v1579_v18 = vrot.slane %v1413_v11, %v2929_v10 }
 0x22f   : > { %v1778_v48 = vrot.slane %v1764_v1, %v2929_v10  ;;  %v1780_v12 = vcombine.low %v1570_v62, %v1569_v40  ;;  %v1830_v55 = vcombine.low %v1621_v37, %v1620_v22  ;;  %v2258_v19 = vpop.f32.mrf.mxu0  ;;  %v1837_v63 = vrot.slane %v1829_v60, %v2929_v10 }
 0x230   : > { %1918 = vst [vmem:[%s3250_s30 + $0x48] sm:$0x3f] %v1828_v5  ;;  %v1794_v8 = vrot.slane %v1571_v27, %v2929_v10  ;;  %v1586_v52 = vrot.slane %v1572_v4, %v2929_v10  ;;  %v1587_v23 = vcombine.high %v1579_v18, %v1579_v18  ;;  %v1949_v15 = vmul.f32 %v1413_v11, %v1413_v11 }
 0x231   : > { %v1779_v13 = vcombine.low %v1771_v39, %v1778_v48  ;;  %v1787_v57 = vrot.slane %v1780_v12, %v2929_v10  ;;  %v1844_v21 = vrot.slane %v1830_v55, %v2929_v10  ;;  %v1929_v35 = vadd.f32 %v1928_v17, %v1413_v11 }
 0x232   : > { %v1588_v50 = vcombine.high %v1586_v52, %v1586_v52  ;;  %v1796_v0 = vcombine.low %v1579_v18, %v1587_v23  ;;  %v1960_v31 = vadd.f32 %v3273_v3, %v1948_v14  ;;  %v1622_v34 = vcombine.high %v1620_v22, %v1620_v22 }
 0x233   : > { %v1795_v24 = vcombine.low %v1787_v57, %v1794_v8  ;;  %1915 = vst [vmem:[%s3250_s30 + $0x30] sm:$0xff] %v1779_v13  ;;  %v1845_v58 = vcombine.low %v1837_v63, %v1844_v21  ;;  %v1930_v47 = vadd.f32 %v1929_v35, %v3279_v43  ;;  %v1951_v3 = vmul.f32 %v3287_v38, %v3287_v38 }
 0x234   : > { %v1797_v25 = vcombine.low %v1586_v52, %v1588_v50  ;;  %v1804_v6 = vrot.slane %v1796_v0, %v2929_v10  ;;  %v1961_v9 = vadd.f32 %v1960_v31, %v1949_v15 }
 0x235   : > { %1916 = vst [vmem:[%s3250_s30 + $0x38] sm:$0x3f] %v1795_v24  ;;  %1919 = vst [vmem:[%s3250_s30 + $0x50] sm:$0xff] %v1845_v58  ;;  %v1931_v59 = vadd.f32 %v1930_v47, %v3287_v38 }
 0x236   : > { %v1811_v45 = vrot.slane %v1797_v25, %v2929_v10  ;;  %v1962_v42 = vadd.f32 %v1961_v9, %v1950_v2 }
 0x238   : > { %v1812_v56 = vcombine.low %v1804_v6, %v1811_v45  ;;  %v1963_v51 = vadd.f32 %v1962_v42, %v1951_v3 }
 0x23a   : > { %1917 = vst [vmem:[%s3250_s30 + $0x40] sm:$0xff] %v1812_v56 }
 0x23c   : > { %v1426_v16 = vpop.f32.mrf.mxu1 }
 0x23d   : > { %v1623_v53 = vcombine.high %v1426_v16, %v1426_v16  ;;  %v1630_v36 = vrot.slane %v1426_v16, %v2929_v10  ;;  %v1952_v46 = vmul.f32 %v1426_v16, %v1426_v16  ;;  %v1932_v28 = vadd.f32 %v1931_v59, %v1426_v16 }
 0x23e   : > { %v2265_v20 = vpop.f32.mrf.mxu1 }
 0x23f   : > { %v1637_v29 = vrot.slane %v1623_v53, %v2929_v10  ;;  %v1638_v33 = vcombine.high %v1630_v36, %v1630_v36  ;;  %v1846_v44 = vcombine.low %v1622_v34, %v1630_v36  ;;  %v1964_v39 = vadd.f32 %v1963_v51, %v1952_v46 }
 0x240   : > { %v1429_v41 = vpop.f32.mrf.mxu1 }
 0x241   : > { %v1639_v61 = vcombine.high %v1637_v29, %v1637_v29  ;;  %v1853_v43 = vrot.slane %v1846_v44, %v2929_v10  ;;  %v1860_v30 = vrot.slane %v1638_v33, %v2929_v10  ;;  %v1640_v7 = vcombine.high %v1429_v41, %v1429_v41 }
 0x242   : > { %v1647_v54 = vrot.slane %v1429_v41, %v2929_v10  ;;  %v2266_v26 = vpop.f32.mrf.mxu1  ;;  %v1953_v32 = vmul.f32 %v1429_v41, %v1429_v41  ;;  %v1933_v62 = vadd.f32 %v1932_v28, %v1429_v41 }
 0x243   : > { %v1861_v49 = vcombine.low %v1853_v43, %v1860_v30  ;;  %v1654_v22 = vrot.slane %v1640_v7, %v2929_v10  ;;  %v1862_v40 = vcombine.low %v1637_v29, %v1639_v61 }
 0x244   : > { %v1655_v38 = vcombine.high %v1647_v54, %v1647_v54  ;;  %v1434_v1 = vpop.f32.mrf.mxu1  ;;  %v1965_v55 = vadd.f32 %v1964_v39, %v1953_v32 }
 0x245   : > { %1920 = vst [vmem:[%s3250_s30 + $0x58] sm:$0x3f] %v1861_v49  ;;  %v1656_v5 = vcombine.high %v1654_v22, %v1654_v22  ;;  %v1663_v37 = vrot.slane %v1434_v1, %v2929_v10  ;;  %v1934_v60 = vsel %vm1348_vm2, %v1434_v1, 0.0  ;;  %v1954_v48 = vmul.f32 %v1434_v1, %v1434_v1 }
 0x246   : > { %v1863_v11 = vcombine.low %v1647_v54, %v1655_v38  ;;  %v1935_v27 = vadd.f32 %v1934_v60, %v1933_v62  ;;  %v2269_v12 = vpop.f32.mrf.mxu1  ;;  %v1870_v18 = vrot.slane %v1862_v40, %v2929_v10 }
 0x247   : > { %v1879_v4 = vcombine.low %v1654_v22, %v1656_v5  ;;  %v1966_v57 = vsel %vm1348_vm2, %v1954_v48, 0.0  ;;  %v1893_v63 = vrot.slane %v1663_v37, %v2929_v10 }
 0x248   : > { %v1877_v19 = vrot.slane %v1863_v11, %v2929_v10  ;;  %v1936_v13 = vrot.slane %v1935_v27, 4  ;;  %v1437_v8 = vpop.f32.mrf.mxu1  ;;  %v1967_v21 = vadd.f32 %v1966_v57, %v1965_v55 }
 0x249   : > { %v1886_v52 = vrot.slane %v1879_v4, %v2929_v10 }
 0x24a   : > { %v1878_v23 = vcombine.low %v1870_v18, %v1877_v19  ;;  %v1937_v24 = vadd.f32 %v1936_v13, %v1935_v27  ;;  %v2270_v50 = vpop.f32.mrf.mxu1  ;;  %v1968_v0 = vrot.slane %v1967_v21, 4 }
 0x24b   : > { %v1894_v58 = vcombine.low %v1886_v52, %v1893_v63 }
 0x24c   : > { %1921 = vst [vmem:[%s3250_s30 + $0x60] sm:$0xff] %v1878_v23  ;;  %v1938_v14 = vrot.slane %v1937_v24, 2  ;;  %v1969_v25 = vadd.f32 %v1968_v0, %v1967_v21 }
 0x24d   : > { %1922 = vst [vmem:[%s3250_s30 + $0x68] sm:$0x3f] %v1894_v58 }
 0x24e   : > { %v1939_v17 = vadd.f32 %v1938_v14, %v1937_v24  ;;  %v1970_v6 = vrot.slane %v1969_v25, 2 }
 0x250   : > { %v1940_v45 = vrot.slane %v1939_v17, 1  ;;  %v1971_v15 = vadd.f32 %v1970_v6, %v1969_v25  ;;  %1977 = sbr.rel (%p2221_p0) target bundleno = 599 (0x257), region = 32 }
 0x252   : > { %v1941_v35 = vadd.f32 %v1940_v45, %v1939_v17  ;;  %v1972_v31 = vrot.slane %v1971_v15, 1 }
 0x254   : > { %v1973_v56 = vadd.f32 %v1972_v31, %v1971_v15 }
 0x255   : > { %v2504_v10 = vmov 0.0  }
 0x256   : > { %1978 = vst [vmem:[%s248_s6] sm:$0x1] %v2504_v10  ;;  %1979 = vst [vmem:[%s3339_s8] sm:$0x1] %v2504_v10 }
 0x257 PF: > { %s2222_s9 = sshll.u32 %s2479_s19, 4  ;;  %s2021_s13 = sshll.u32 %s248_s6, 4  ;;  %s3350_s13 = int_to_ptr.vmem [resolvable:$true] %s2021_s13 }
 0x258   : > { %s3348_s18 = scalar_lea.hbm %s3428_s3, %s2222_s9  ;;  %s3356_s7 = scalar_lea.hbm %s3429_s4, %s2222_s9 }
 0x259   : > { %s2035_s19 = sshll.u32 %s3339_s8, 4  ;;  %s2000_s24 = scalar_lea.sflag [#allocation3], %s2687_s11  ;;  %s2036_s19 = int_to_ptr.vmem [resolvable:$true] %s2035_s19 }
 0x25a   : > { %s2369_s29 = scalar_lea.vmem %s3350_s13, 16  ;;  %s2505_s30 = smov [#allocation2]  }
 0x25b   : > { %p2370_p1 = scmp.ne.s32.totalorder %s3350_s13, %s2369_s29  ;;  %s2373_s10 = sshll.u32 %s2505_s30, 4  ;;  %s2374_s10 = int_to_ptr.vmem [resolvable:$false] %s2373_s10 }
 0x25c   : > { %s2375_s12 = scalar_lea.vmem %s2374_s10, 32  ;;  %p2376_p5 = scmp.lt.s32.totalorder %s3350_s13, %s2374_s10 }
 0x25d   : > { %v1980_v9 = vld [vmem:[%s248_s6] sm:$0x1]  ;;  %p2371_p2 = pnand %p2370_p1, %p2581_p3  ;;  %p2377_p6 = scmp.lt.s32.totalorder %s2375_s12, %s2369_s29 }
 0x25e   : > { %v1983_v47 = vld [vmem:[%s3339_s8] sm:$0x1]  ;;  %v1981_v16 = vadd.f32 %v1980_v9, %v1941_v35 }
 0x25f   : > { %v1984_v2 = vadd.f32 %v1983_v47, %v1973_v56  ;;  %p2372_p4 = pneg %p2371_p2  ;;  %p2378_p7 = por %p2377_p6, %p2376_p5 }
 0x260   : > { %1982 = vst [vmem:[%s248_s6] sm:$0x1] %v1981_v16 }
 0x261   : > { %1985 = vst [vmem:[%s3339_s8] sm:$0x1] %v1984_v2  ;;  %p2379_p8 = pnand %p2378_p7, %p2372_p4 }
 0x263   : > { %2382 = shalt.err (!%p2379_p8)
}
 0x264   : > { %s2383_s6 = scalar_lea.hbm %s3348_s18, 16  ;;  %s2387_s14 = scalar_lea.hbm %s3428_s3, 32 }
 0x265   : > { %p2384_p10 = scmp.ne.s32.totalorder %s3348_s18, %s2383_s6  ;;  %p2388_p13 = scmp.lt.s32.totalorder %s3348_s18, %s3428_s3 }
 0x266   : > { %p2389_p0 = scmp.lt.s32.totalorder %s2387_s14, %s2383_s6 }
 0x267   : > { %p2385_p11 = pnand %p2384_p10, %p2581_p3 }
 0x268   : > { %p2390_p1 = por %p2389_p0, %p2388_p13 }
 0x269   : > { %p2386_p12 = pneg %p2385_p11 }
 0x26b   : > { %p2391_p2 = pnand %p2390_p1, %p2386_p12 }
 0x26d   : > { %2394 = shalt.err (!%p2391_p2)
}
 0x26e   : > { %2278 = dma.vmem_to_hbm [thread:$0]  (%p2581_p3), %s3350_s13, 16, %s3348_s18, %s2000_s24  }
 0x26f   : > { %s2004_s29 = scalar_lea.sflag [#allocation5], %s2687_s11  ;;  %s2395_s10 = scalar_lea.vmem %s2036_s19, 16 }
 0x270   : > { %p2396_p4 = scmp.ne.s32.totalorder %s2036_s19, %s2395_s10  ;;  %s2506_s12 = smov [#allocation4]  }
 0x271   : > { %s2399_s8 = sshll.u32 %s2506_s12, 4  ;;  %s2400_s8 = int_to_ptr.vmem [resolvable:$false] %s2399_s8 }
 0x272   : > { %p2397_p5 = pnand %p2396_p4, %p2581_p3  ;;  %s2401_s6 = scalar_lea.vmem %s2400_s8, 32 }
 0x273   : > { %p2402_p7 = scmp.lt.s32.totalorder %s2036_s19, %s2400_s8  ;;  %p2403_p8 = scmp.lt.s32.totalorder %s2401_s6, %s2395_s10 }
 0x274   : > { %p2398_p6 = pneg %p2397_p5 }
 0x275   : > { %p2404_p10 = por %p2403_p8, %p2402_p7 }
 0x277   : > { %p2405_p11 = pnand %p2404_p10, %p2398_p6 }
 0x279   : > { %2408 = shalt.err (!%p2405_p11)
}
 0x27a   : > { %s2409_s18 = scalar_lea.hbm %s3356_s7, 16  ;;  %s2413_s24 = scalar_lea.hbm %s3429_s4, 32 }
 0x27b   : > { %p2410_p12 = scmp.ne.s32.totalorder %s3356_s7, %s2409_s18  ;;  %p2414_p1 = scmp.lt.s32.totalorder %s3356_s7, %s3429_s4 }
 0x27c   : > { %p2415_p2 = scmp.lt.s32.totalorder %s2413_s24, %s2409_s18 }
 0x27d   : > { %p2411_p13 = pnand %p2410_p12, %p2581_p3 }
 0x27e   : > { %p2416_p4 = por %p2415_p2, %p2414_p1 }
 0x27f   : > { %p2412_p0 = pneg %p2411_p13 }
 0x281   : > { %p2417_p5 = pnand %p2416_p4, %p2412_p0 }
 0x283   : > { %2420 = shalt.err (!%p2417_p5)
}
 0x284   : > { %2279 = dma.vmem_to_hbm [thread:$0]  (%p2581_p3), %s2036_s19, 16, %s3356_s7, %s2004_s29  }
 0x285 PF: > { %p2289_p6 = scmp.ge.s32.totalorder %s2491_s22, 2  ;;  %s2063_s23 = sand.u32 1, %s2463_s15  }
 0x286   : > { %s2064_s30 = scalar_lea.sflag [#allocation3], %s2063_s23 }
 0x287   : > { %p2283_p7 = pnand %p2289_p6, %p2591_p9 }
 0x289   : > { %p2284_p8 = pneg %p2283_p7 }
 0x28b   : > { %2454 = dma.done.wait (%p2284_p8), %s2064_s30, 16  }
 0x28c   : > { %2456 = vsyncadd (%p2284_p8), %s2064_s30, 4294967280  ;;  %s2072_s10 = scalar_lea.sflag [#allocation5], %s2063_s23 }
 0x28d   : > { %2458 = dma.done.wait (%p2284_p8), %s2072_s10, 16  }
 0x28e   : > { %2460 = vsyncadd (%p2284_p8), %s2072_s10, 4294967280  ;;  %s21_s22 = sadd.s32 1, %s2491_s22   ;;  %s3432_s15 = smov %s2467_s16 }
 0x28f   : > { %p18_p10 = scmp.ge.s32.totalorder %s21_s22, 6   ;;  %s3433_s16 = smov %s2471_s17 }
 0x290   : > { %s3434_s17 = smov %s2599_s5  ;;  %s3435_s18 = smov %s2483_s20 }
 0x291   : > { %s3436_s19 = smov %s2487_s21  ;;  %s3437_s20 = smov %s3440_s25 }
 0x292   : > { %s3438_s21 = smov %s3444_s26  ;;  %20 = sbr.rel (!%p18_p10) target bundleno = 7 (0x7), region = 100 }
 0x297   :  { %2076 = vsyncpa [#allocation3], 1 }
 0x298   :  { %2078 = vsyncpa [#allocation3 + $0x1], 1 }
 0x299   :  { %2079 = vsyncpa [#allocation5], 1 }
 0x29a   :  { %2081 = vsyncpa [#allocation5 + $0x1], 1 }

</bundles_post_ra>
